<compile_context>
chip_gen: v5e
topology: v5e:2x2
jax: 0.10.0
libtpu: 0.0.40
codegen_flags: <defaults>
</compile_context>

<pallas_src>
import numpy as np

import jax
import jax.numpy as jnp
from jax.experimental import pallas as pl
from jax.experimental.pallas import tpu as pltpu


WEIGHT_ORDER = ["wqkv", "bqkv", "wo", "bo", "ln1_g", "ln1_b",
                "cw1", "cb1", "cw2", "cb2", "ln2_g", "ln2_b"]


# ----------------------------------------------------------------------------
# Host-side weight re-layout: fused QKV (scale folded into Q), per-layer stack.
# MXU matrices stored in `mxu_dtype`; biases / LN params stay f32.
# ----------------------------------------------------------------------------
def stack_decoder_params(params, cfg, mxu_dtype=jnp.float32):
    dk = cfg["d_k"]
    scale = 1.0 / float(dk) ** 0.5

    def prep(lp):
        wqkv = jnp.concatenate([lp["wq"] * scale, lp["wk"], lp["wv"]], axis=-1)
        bqkv = jnp.concatenate([lp["bq"] * scale, lp["bk"], lp["bv"]], axis=-1)
        return {
            "wqkv": wqkv.astype(mxu_dtype),        # (D, 3*H*dk)
            "bqkv": bqkv,                          # (1, 3*H*dk)  f32
            "wo": lp["wo"].astype(mxu_dtype),      # (H*dv, D)
            "bo": lp["bo"],
            "ln1_g": lp["ln1_g"], "ln1_b": lp["ln1_b"],
            "cw1": lp["cw1"].astype(mxu_dtype),    # (K1, D, d_inner)
            "cb1": lp["cb1"],
            "cw2": lp["cw2"].astype(mxu_dtype),    # (K2, d_inner, D)
            "cb2": lp["cb2"],
            "ln2_g": lp["ln2_g"], "ln2_b": lp["ln2_b"],
        }

    per = [prep(lp) for lp in params["layers"]]
    return {n: jnp.stack([p[n] for p in per], axis=0) for n in WEIGHT_ORDER}


# ----------------------------------------------------------------------------
# One fused pallas_call for the whole FFT-block stack.
# grid = (B, n_layers): batch "parallel" (megacore-shardable), layers "arbitrary".
# ----------------------------------------------------------------------------
def fused_fft_stack(x, npm, kpk, w, cfg, mxu_dtype=jnp.float32):
    B, L, D = x.shape
    H, dk, dv = cfg["n_head"], cfg["d_k"], cfg["d_v"]
    dinner = cfg["d_inner"]
    K1, K2 = cfg["kernel"]
    p1, p2 = (K1 - 1) // 2, (K2 - 1) // 2
    n_layers = cfg["n_layers"]
    HDK, HDV = H * dk, H * dv

    def ln(v, g, b):
        mu = jnp.mean(v, axis=-1, keepdims=True)
        var = jnp.mean((v - mu) ** 2, axis=-1, keepdims=True)
        return (v - mu) * jax.lax.rsqrt(var + 1e-5) * g + b

    def shift_rows(v, s):
        # out[l] = v[l + s] if 0 <= l+s < L else 0   (rows = sublane axis)
        if s == 0:
            return v
        Lv = v.shape[0]
        rolled = pltpu.roll(v, (-s) % Lv, axis=0)
        row = jax.lax.broadcasted_iota(jnp.int32, v.shape, 0)
        ok = jnp.logical_and(row + s >= 0, row + s < Lv)
        return jnp.where(ok, rolled, jnp.float32(0.0))

    def kernel(x_ref, npm_ref, kpk_ref,
               wqkv_ref, bqkv_ref, wo_ref, bo_ref, g1_ref, b1_ref,
               cw1_ref, cb1_ref, cw2_ref, cb2_ref, g2_ref, b2_ref,
               o_ref):
        li = pl.program_id(1)

        # Output block index is constant over the layer axis -> the block stays
        # resident in VMEM across all layers and doubles as the layer carry.
        @pl.when(li == 0)
        def _():
            o_ref[0] = x_ref[0]

        xb = o_ref[0].astype(jnp.float32)          # (L, D) carried activation
        npm_b = npm_ref[0]                         # (L, 1) 1.0 where query not PAD
        kp_b = kpk_ref[0]                          # (1, L) 1.0 where key IS PAD

        # ---- multi-head self-attention: single fused QKV matmul -------------
        qkv = jnp.dot(xb.astype(mxu_dtype), wqkv_ref[li],
                      preferred_element_type=jnp.float32) + bqkv_ref[li]
        q = qkv[:, 0:HDK].reshape(L, H, dk).transpose(1, 0, 2)        # (H,L,dk)
        k = qkv[:, HDK:2 * HDK].reshape(L, H, dk).transpose(1, 0, 2)  # (H,L,dk)
        v = qkv[:, 2 * HDK:2 * HDK + HDV].reshape(L, H, dv).transpose(1, 0, 2)

        # 1/sqrt(dk) already folded into wq/bq host-side.
        s = jnp.einsum("hqd,hkd->hqk", q.astype(mxu_dtype), k.astype(mxu_dtype),
                       preferred_element_type=jnp.float32)
        # -1e30 (not -inf): an all-padded row gives finite junk instead of NaN;
        # such rows are zeroed by the non_pad multiply anyway.
        s = jnp.where(kp_b[None, :, :] > 0.5, jnp.float32(-1e30), s)
        m = jnp.max(s, axis=-1, keepdims=True)
        e = jnp.exp(s - m)
        inv = pl.reciprocal(jnp.sum(e, axis=-1, keepdims=True), approx=True)
        # Normalize AFTER the PV matmul: divides touch (H,L,dv), not (H,L,L).
        oh = jnp.einsum("hqk,hkd->hqd", e.astype(mxu_dtype), v.astype(mxu_dtype),
                        preferred_element_type=jnp.float32) * inv
        oc = oh.transpose(1, 0, 2).reshape(L, HDV)          # heads -> lane axis
        ao = jnp.dot(oc.astype(mxu_dtype), wo_ref[li],
                     preferred_element_type=jnp.float32) + bo_ref[li]
        y = ln(ao + xb, g1_ref[li], b1_ref[li]) * npm_b

        # ---- position-wise FFN: K-tap accumulated conv matmuls --------------
        cw1 = cw1_ref[li]                                   # (K1, D, d_inner)
        h1 = cb1_ref[li] + jnp.dot(shift_rows(y, -p1).astype(mxu_dtype), cw1[0],
                                   preferred_element_type=jnp.float32)
        for t in range(1, K1):
            h1 = h1 + jnp.dot(shift_rows(y, t - p1).astype(mxu_dtype), cw1[t],
                              preferred_element_type=jnp.float32)
        h1 = jnp.maximum(h1, 0.0)

        cw2 = cw2_ref[li]                                   # (K2, d_inner, D)
        z = cb2_ref[li] + jnp.dot(shift_rows(h1, -p2).astype(mxu_dtype), cw2[0],
                                  preferred_element_type=jnp.float32)
        for t in range(1, K2):
            z = z + jnp.dot(shift_rows(h1, t - p2).astype(mxu_dtype), cw2[t],
                            preferred_element_type=jnp.float32)
        out = ln(z + y, g2_ref[li], b2_ref[li]) * npm_b

        o_ref[0] = out.astype(o_ref.dtype)        # carry to next layer / final

    def resident_spec(arr):
        zeros = (0,) * arr.ndim
        return pl.BlockSpec(arr.shape, lambda b, l, _z=zeros: _z)

    in_specs = [
        pl.BlockSpec((1, L, D), lambda b, l: (b, 0, 0)),   # x (resident per b)
        pl.BlockSpec((1, L, 1), lambda b, l: (b, 0, 0)),   # non-pad (query) mask
        pl.BlockSpec((1, 1, L), lambda b, l: (b, 0, 0)),   # key-pad mask
    ] + [resident_spec(w[n]) for n in WEIGHT_ORDER]

    # Explicit VMEM budget: resident weights + activation blocks + largest temps.
    weight_bytes = sum(int(np.prod(w[n].shape)) * w[n].dtype.itemsize
                       for n in WEIGHT_ORDER)
    block_bytes = 2 * 2 * (L * D * 4)                       # x/out, double-buffered
    temp_bytes = 4 * (3 * H * L * L + 3 * L * (3 * HDK) + 2 * L * dinner + 6 * L * D)
    vmem_budget = int(min(max(weight_bytes + block_bytes + temp_bytes + (8 << 20),
                              16 << 20), 64 << 20))

    return pl.pallas_call(
        kernel,
        out_shape=jax.ShapeDtypeStruct((B, L, D), x.dtype),
        grid=(B, n_layers),
        in_specs=in_specs,
        out_specs=pl.BlockSpec((1, L, D), lambda b, l: (b, 0, 0)),
        compiler_params=pltpu.CompilerParams(
            dimension_semantics=("parallel", "arbitrary"),
            vmem_limit_bytes=vmem_budget),
    )(x, npm, kpk, *[w[n] for n in WEIGHT_ORDER])


# ----------------------------------------------------------------------------
# Decoder forward (glue in plain JAX: mask vectors, embedding gather).
# ----------------------------------------------------------------------------
def decoder_forward(enc_seq, enc_pos, params, cfg, mxu_dtype=jnp.float32):
    pad = cfg["PAD"]
    npm = (enc_pos != pad).astype(jnp.float32)[..., None]       # (B, L, 1)
    kpk = (enc_pos == pad).astype(jnp.float32)[:, None, :]      # (B, 1, L)
    x = enc_seq + params["pos_table"][enc_pos]                  # pos embedding
    stacked = stack_decoder_params(params, cfg, mxu_dtype)
    return fused_fft_stack(x, npm, kpk, stacked, cfg, mxu_dtype)


# ----------------------------------------------------------------------------
# Pure-JAX reference (mirrors the PyTorch math) for validation.
# ----------------------------------------------------------------------------
def decoder_reference(enc_seq, enc_pos, params, cfg):
    pad = cfg["PAD"]
    B, L, D = enc_seq.shape
    H, dk, dv = cfg["n_head"], cfg["d_k"], cfg["d_v"]
    non_pad = (enc_pos != pad).astype(jnp.float32)[..., None]
    am = jnp.broadcast_to((enc_pos == pad)[:, None, :], (B, L, L))

    def ln(v, g, b):
        mu = v.mean(-1, keepdims=True)
        var = ((v - mu) ** 2).mean(-1, keepdims=True)
        return (v - mu) / jnp.sqrt(var + 1e-5) * g + b

    x = enc_seq + params["pos_table"][enc_pos]
    for lp in params["layers"]:
        residual = x
        q = x @ lp["wq"] + lp["bq"]
        k = x @ lp["wk"] + lp["bk"]
        v = x @ lp["wv"] + lp["bv"]
        qh = q.reshape(B, L, H, dk).transpose(0, 2, 1, 3)
        kh = k.reshape(B, L, H, dk).transpose(0, 2, 1, 3)
        vh = v.reshape(B, L, H, dv).transpose(0, 2, 1, 3)
        s = jnp.einsum("bhqd,bhkd->bhqk", qh, kh) / jnp.sqrt(jnp.float32(dk))
        s = jnp.where(am[:, None], -jnp.inf, s)
        p = jax.nn.softmax(s, axis=-1)
        o = jnp.einsum("bhqk,bhkd->bhqd", p, vh).transpose(0, 2, 1, 3).reshape(B, L, H * dv)
        o = o @ lp["wo"] + lp["bo"]
        y = ln(o + residual, lp["ln1_g"], lp["ln1_b"]) * non_pad

        r2 = y
        K1 = lp["cw1"].shape[0]; p1 = (K1 - 1) // 2
        ypad = jnp.pad(y, ((0, 0), (p1, p1), (0, 0)))
        h = lp["cb1"] + sum(jnp.einsum("bld,df->blf", ypad[:, t:t + L], lp["cw1"][t])
                            for t in range(K1))
        h = jnp.maximum(h, 0.0)
        K2 = lp["cw2"].shape[0]; p2 = (K2 - 1) // 2
        hpad = jnp.pad(h, ((0, 0), (p2, p2), (0, 0)))
        z = lp["cb2"] + sum(jnp.einsum("blf,fd->bld", hpad[:, t:t + L], lp["cw2"][t])
                            for t in range(K2))
        x = ln(z + r2, lp["ln2_g"], lp["ln2_b"]) * non_pad
    return x


# ----------------------------------------------------------------------------
# Deterministic parameter initialization (shapes from Decoder.__init__).
# ----------------------------------------------------------------------------
def init_params(key, cfg):
    D, H = cfg["d_model"], cfg["n_head"]
    dk, dv, dinner = cfg["d_k"], cfg["d_v"], cfg["d_inner"]
    K1, K2 = cfg["kernel"]

    def nrm(k, shape, std):
        return (std * jax.random.normal(k, shape, jnp.float32)).astype(jnp.float32)

    keys = jax.random.split(key, cfg["n_layers"] + 1)
    pos_table = nrm(keys[0], (cfg["n_position"], D), 0.02)
    pos_table = pos_table.at[cfg["PAD"]].set(0.0)        # padding_idx row is zero

    layers = []
    for li in range(cfg["n_layers"]):
        ks = jax.random.split(keys[li + 1], 6)
        lp = {
            "wq": nrm(ks[0], (D, H * dk), (2.0 / (D + dk)) ** 0.5),
            "bq": jnp.zeros((1, H * dk), jnp.float32),
            "wk": nrm(ks[1], (D, H * dk), (2.0 / (D + dk)) ** 0.5),
            "bk": jnp.zeros((1, H * dk), jnp.float32),
            "wv": nrm(ks[2], (D, H * dv), (2.0 / (D + dv)) ** 0.5),
            "bv": jnp.zeros((1, H * dv), jnp.float32),
            "wo": nrm(ks[3], (H * dv, D), (1.0 / D) ** 0.5),
            "bo": jnp.zeros((1, D), jnp.float32),
            "ln1_g": jnp.ones((1, D), jnp.float32),
            "ln1_b": jnp.zeros((1, D), jnp.float32),
            "cw1": nrm(ks[4], (K1, D, dinner), (1.0 / (D * K1)) ** 0.5),
            "cb1": jnp.zeros((1, dinner), jnp.float32),
            "cw2": nrm(ks[5], (K2, dinner, D), (1.0 / (dinner * K2)) ** 0.5),
            "cb2": jnp.zeros((1, D), jnp.float32),
            "ln2_g": jnp.ones((1, D), jnp.float32),
            "ln2_b": jnp.zeros((1, D), jnp.float32),
        }
        layers.append(lp)
    return {"pos_table": pos_table, "layers": layers}


if __name__ == "__main__":
    cfg = dict(
        max_seq_len=8,
        n_position=8 + 1,
        d_model=32,          # encoder_dim
        n_head=2,            # encoder_head
        d_k=16, d_v=16,      # encoder_dim // encoder_head
        d_inner=64,          # encoder_conv1d_filter_size
        n_layers=2,          # decoder_n_layer
        kernel=(3, 3),       # fft_conv1d_kernel ("same" padding)
        PAD=0,
    )

    key = jax.random.PRNGKey(0)
    kp, kx = jax.random.split(key)
    params = init_params(kp, cfg)

    B, L, D = 2, cfg["max_seq_len"], cfg["d_model"]
    enc_seq = jax.random.normal(kx, (B, L, D), jnp.float32)
    enc_pos = jnp.array([[1, 2, 3, 4, 5, 6, 7, 8],
                         [1, 2, 3, 4, 5, 0, 0, 0]], dtype=jnp.int32)

    ref = decoder_reference(enc_seq, enc_pos, params, cfg)

    # f32 MXU path: tight parity (tolerance covers the approx EUP reciprocal
    # used for the softmax denominator).
    out_f32 = jax.block_until_ready(
        decoder_forward(enc_seq, enc_pos, params, cfg, mxu_dtype=jnp.float32))
    np.testing.assert_allclose(np.asarray(out_f32), np.asarray(ref),
                               rtol=5e-3, atol=5e-3)

    # bf16 MXU inputs with f32 accumulation (deployment fast path): looser
    # tolerance for bf16 input rounding.
    out_bf16 = jax.block_until_ready(
        decoder_forward(enc_seq, enc_pos, params, cfg, mxu_dtype=jnp.bfloat16))
    np.testing.assert_allclose(np.asarray(out_bf16), np.asarray(ref),
                               rtol=5e-2, atol=5e-2)

    print("KERNEL_OK")
</pallas_src>

<mosaic_0001>
module attributes {stable_mosaic.version = 11 : i64} {
  func.func @kernel(%arg0: i32, %arg1: i32, %arg2: memref<1x8x32xf32, #tpu.memory_space<vmem>>, %arg3: memref<1x8x1xf32, #tpu.memory_space<vmem>>, %arg4: memref<1x1x8xf32, #tpu.memory_space<vmem>>, %arg5: memref<2x32x96xf32, #tpu.memory_space<vmem>>, %arg6: memref<2x1x96xf32, #tpu.memory_space<vmem>>, %arg7: memref<2x32x32xf32, #tpu.memory_space<vmem>>, %arg8: memref<2x1x32xf32, #tpu.memory_space<vmem>>, %arg9: memref<2x1x32xf32, #tpu.memory_space<vmem>>, %arg10: memref<2x1x32xf32, #tpu.memory_space<vmem>>, %arg11: memref<2x3x32x64xf32, #tpu.memory_space<vmem>>, %arg12: memref<2x1x64xf32, #tpu.memory_space<vmem>>, %arg13: memref<2x3x64x32xf32, #tpu.memory_space<vmem>>, %arg14: memref<2x1x32xf32, #tpu.memory_space<vmem>>, %arg15: memref<2x1x32xf32, #tpu.memory_space<vmem>>, %arg16: memref<2x1x32xf32, #tpu.memory_space<vmem>>, %arg17: memref<1x8x32xf32, #tpu.memory_space<vmem>>) attributes {dimension_semantics = [#tpu.dimension_semantics<parallel>, #tpu.dimension_semantics<arbitrary>], iteration_bounds = array<i64: 2, 2>, scalar_prefetch = 0 : i64, scratch_operands = 0 : i64, tpu.core_type = #tpu.core_type<tc>, window_params = [{transform_indices = @transform_0, window_bounds = array<i64: 1, 8, 32>}, {transform_indices = @transform_1, window_bounds = array<i64: 1, 8, 1>}, {transform_indices = @transform_2, window_bounds = array<i64: 1, 1, 8>}, {pipeline_mode = #tpu.pipeline_mode<synchronous>, transform_indices = @transform_3, window_bounds = array<i64: 2, 32, 96>}, {pipeline_mode = #tpu.pipeline_mode<synchronous>, transform_indices = @transform_4, window_bounds = array<i64: 2, 1, 96>}, {pipeline_mode = #tpu.pipeline_mode<synchronous>, transform_indices = @transform_5, window_bounds = array<i64: 2, 32, 32>}, {pipeline_mode = #tpu.pipeline_mode<synchronous>, transform_indices = @transform_6, window_bounds = array<i64: 2, 1, 32>}, {pipeline_mode = #tpu.pipeline_mode<synchronous>, transform_indices = @transform_7, window_bounds = array<i64: 2, 1, 32>}, {pipeline_mode = #tpu.pipeline_mode<synchronous>, transform_indices = @transform_8, window_bounds = array<i64: 2, 1, 32>}, {pipeline_mode = #tpu.pipeline_mode<synchronous>, transform_indices = @transform_9, window_bounds = array<i64: 2, 3, 32, 64>}, {pipeline_mode = #tpu.pipeline_mode<synchronous>, transform_indices = @transform_10, window_bounds = array<i64: 2, 1, 64>}, {pipeline_mode = #tpu.pipeline_mode<synchronous>, transform_indices = @transform_11, window_bounds = array<i64: 2, 3, 64, 32>}, {pipeline_mode = #tpu.pipeline_mode<synchronous>, transform_indices = @transform_12, window_bounds = array<i64: 2, 1, 32>}, {pipeline_mode = #tpu.pipeline_mode<synchronous>, transform_indices = @transform_13, window_bounds = array<i64: 2, 1, 32>}, {pipeline_mode = #tpu.pipeline_mode<synchronous>, transform_indices = @transform_14, window_bounds = array<i64: 2, 1, 32>}, {transform_indices = @transform_15, window_bounds = array<i64: 1, 8, 32>}]} {
    %c0_i32 = arith.constant 0 : i32
    %0 = arith.cmpi eq, %arg1, %c0_i32 : i32
    %1 = arith.extui %0 : i1 to i32
    %c0_i32_0 = arith.constant 0 : i32
    %2 = arith.cmpi ne, %1, %c0_i32_0 : i32
    scf.if %2 {
      %c0_82 = arith.constant 0 : index
      %c0_83 = arith.constant 0 : index
      %c0_84 = arith.constant 0 : index
      %214 = vector.load %arg2[%c0_82, %c0_83, %c0_84] : memref<1x8x32xf32, #tpu.memory_space<vmem>>, vector<1x8x32xf32>
      %215 = vector.shape_cast %214 : vector<1x8x32xf32> to vector<8x32xf32>
      %c0_85 = arith.constant 0 : index
      %c0_86 = arith.constant 0 : index
      %c0_87 = arith.constant 0 : index
      %216 = vector.load %arg17[%c0_85, %c0_86, %c0_87] : memref<1x8x32xf32, #tpu.memory_space<vmem>>, vector<1x8x32xf32>
      %217 = vector.shape_cast %216 : vector<1x8x32xf32> to vector<8x32xf32>
      %218 = vector.shape_cast %215 : vector<8x32xf32> to vector<1x8x32xf32>
      tpu.vector_store %arg17[%c0_85, %c0_86, %c0_87], %218 {strides = array<i32>} : memref<1x8x32xf32, #tpu.memory_space<vmem>>, vector<1x8x32xf32>,
    } else {
    }
    %c0 = arith.constant 0 : index
    %c0_1 = arith.constant 0 : index
    %c0_2 = arith.constant 0 : index
    %3 = vector.load %arg17[%c0, %c0_1, %c0_2] : memref<1x8x32xf32, #tpu.memory_space<vmem>>, vector<1x8x32xf32>
    %4 = vector.shape_cast %3 : vector<1x8x32xf32> to vector<8x32xf32>
    %c0_3 = arith.constant 0 : index
    %c0_4 = arith.constant 0 : index
    %c0_5 = arith.constant 0 : index
    %5 = vector.load %arg3[%c0_3, %c0_4, %c0_5] : memref<1x8x1xf32, #tpu.memory_space<vmem>>, vector<1x8x1xf32>
    %6 = vector.shape_cast %5 : vector<1x8x1xf32> to vector<8x1xf32>
    %c0_6 = arith.constant 0 : index
    %c0_7 = arith.constant 0 : index
    %c0_8 = arith.constant 0 : index
    %7 = vector.load %arg4[%c0_6, %c0_7, %c0_8] : memref<1x1x8xf32, #tpu.memory_space<vmem>>, vector<1x1x8xf32>
    %8 = vector.shape_cast %7 : vector<1x1x8xf32> to vector<1x8xf32>
    %9 = arith.index_cast %arg1 : i32 to index
    %c0_9 = arith.constant 0 : index
    %c0_10 = arith.constant 0 : index
    %10 = vector.load %arg5[%9, %c0_9, %c0_10] : memref<2x32x96xf32, #tpu.memory_space<vmem>>, vector<1x32x96xf32>
    %11 = vector.shape_cast %10 : vector<1x32x96xf32> to vector<32x96xf32>
    %cst = arith.constant dense<0.000000e+00> : vector<8x96xf32>
    %12 = tpu.matmul %4, %11, %cst {dimension_numbers = #tpu.dot_dimension_numbers<[1], [0], [0], [1], [0, 0, 1, 1], [], []>} : vector<8x32xf32>, vector<32x96xf32>, vector<8x96xf32> -> vector<8x96xf32>
    %13 = arith.index_cast %arg1 : i32 to index
    %c0_11 = arith.constant 0 : index
    %c0_12 = arith.constant 0 : index
    %14 = vector.load %arg6[%13, %c0_11, %c0_12] : memref<2x1x96xf32, #tpu.memory_space<vmem>>, vector<1x1x96xf32>
    %15 = vector.shape_cast %14 : vector<1x1x96xf32> to vector<1x96xf32>
    %16 = vector.broadcast %15 : vector<1x96xf32> to vector<8x96xf32>
    %17 = arith.addf %12, %16 : vector<8x96xf32>
    %18 = vector.extract_strided_slice %17 {offsets = [0, 0], sizes = [8, 32], strides = [1, 1]} : vector<8x96xf32> to vector<8x32xf32>
    %19 = vector.shape_cast %18 : vector<8x32xf32> to vector<8x2x16xf32>
    %20 = tpu.transpose %19, [1, 0, 2] : vector<8x2x16xf32> -> vector<2x8x16xf32>
    %21 = vector.extract_strided_slice %17 {offsets = [0, 32], sizes = [8, 32], strides = [1, 1]} : vector<8x96xf32> to vector<8x32xf32>
    %22 = vector.shape_cast %21 : vector<8x32xf32> to vector<8x2x16xf32>
    %23 = tpu.transpose %22, [1, 0, 2] : vector<8x2x16xf32> -> vector<2x8x16xf32>
    %24 = vector.extract_strided_slice %17 {offsets = [0, 64], sizes = [8, 32], strides = [1, 1]} : vector<8x96xf32> to vector<8x32xf32>
    %25 = vector.shape_cast %24 : vector<8x32xf32> to vector<8x2x16xf32>
    %26 = tpu.transpose %25, [1, 0, 2] : vector<8x2x16xf32> -> vector<2x8x16xf32>
    "tpu.trace_start"() <{level = 10 : i32, message = "hqd,hkd->hqk"}> : () -> ()
    %cst_13 = arith.constant dense<0.000000e+00> : vector<2x8x8xf32>
    %27 = tpu.matmul %20, %23, %cst_13 {dimension_numbers = #tpu.dot_dimension_numbers<[2], [2], [1], [1], [0, 0, 0, 1, 1, 1], [0], [0]>} : vector<2x8x16xf32>, vector<2x8x16xf32>, vector<2x8x8xf32> -> vector<2x8x8xf32>
    "tpu.trace_stop"() : () -> ()
    %28 = vector.shape_cast %8 : vector<1x8xf32> to vector<1x1x8xf32>
    %cst_14 = arith.constant 5.000000e-01 : f32
    %29 = vector.broadcast %cst_14 : f32 to vector<1x1x8xf32>
    %30 = arith.cmpf ogt, %28, %29 : vector<1x1x8xf32>
    %cst_15 = arith.constant -1.000000e+30 : f32
    %31 = vector.shape_cast %30 : vector<1x1x8xi1> to vector<1x1x8xi1>
    %32 = vector.broadcast %31 : vector<1x1x8xi1> to vector<2x8x8xi1>
    %33 = vector.broadcast %cst_15 : f32 to vector<2x8x8xf32>
    %34 = arith.select %32, %33, %27 : vector<2x8x8xi1>, vector<2x8x8xf32>
    %cst_16 = arith.constant dense<0xFF800000> : vector<2x8xf32>
    %35 = vector.multi_reduction <maximumf>, %34, %cst_16 [2] : vector<2x8x8xf32> to vector<2x8xf32>
    %36 = vector.shape_cast %35 : vector<2x8xf32> to vector<2x8x1xf32>
    %37 = vector.broadcast %36 : vector<2x8x1xf32> to vector<2x8x8xf32>
    %38 = arith.subf %34, %37 : vector<2x8x8xf32>
    %39 = math.exp %38 : vector<2x8x8xf32>
    %cst_17 = arith.constant dense<0.000000e+00> : vector<2x8xf32>
    %40 = vector.multi_reduction <add>, %39, %cst_17 [2] : vector<2x8x8xf32> to vector<2x8xf32>
    %41 = vector.shape_cast %40 : vector<2x8xf32> to vector<2x8x1xf32>
    %42 = tpu.reciprocal %41 {approx = true} : vector<2x8x1xf32> -> vector<2x8x1xf32>
    "tpu.trace_start"() <{level = 10 : i32, message = "hqk,hkd->hqd"}> : () -> ()
    %cst_18 = arith.constant dense<0.000000e+00> : vector<2x8x16xf32>
    %43 = tpu.matmul %39, %26, %cst_18 {dimension_numbers = #tpu.dot_dimension_numbers<[2], [1], [1], [2], [0, 0, 0, 1, 1, 2], [0], [0]>} : vector<2x8x8xf32>, vector<2x8x16xf32>, vector<2x8x16xf32> -> vector<2x8x16xf32>
    "tpu.trace_stop"() : () -> ()
    %44 = vector.broadcast %42 : vector<2x8x1xf32> to vector<2x8x16xf32>
    %45 = arith.mulf %43, %44 : vector<2x8x16xf32>
    %46 = tpu.transpose %45, [1, 0, 2] : vector<2x8x16xf32> -> vector<8x2x16xf32>
    %47 = vector.shape_cast %46 : vector<8x2x16xf32> to vector<8x32xf32>
    %48 = arith.index_cast %arg1 : i32 to index
    %c0_19 = arith.constant 0 : index
    %c0_20 = arith.constant 0 : index
    %49 = vector.load %arg7[%48, %c0_19, %c0_20] : memref<2x32x32xf32, #tpu.memory_space<vmem>>, vector<1x32x32xf32>
    %50 = vector.shape_cast %49 : vector<1x32x32xf32> to vector<32x32xf32>
    %cst_21 = arith.constant dense<0.000000e+00> : vector<8x32xf32>
    %51 = tpu.matmul %47, %50, %cst_21 {dimension_numbers = #tpu.dot_dimension_numbers<[1], [0], [0], [1], [0, 0, 1, 1], [], []>} : vector<8x32xf32>, vector<32x32xf32>, vector<8x32xf32> -> vector<8x32xf32>
    %52 = arith.index_cast %arg1 : i32 to index
    %c0_22 = arith.constant 0 : index
    %c0_23 = arith.constant 0 : index
    %53 = vector.load %arg8[%52, %c0_22, %c0_23] : memref<2x1x32xf32, #tpu.memory_space<vmem>>, vector<1x1x32xf32>
    %54 = vector.shape_cast %53 : vector<1x1x32xf32> to vector<1x32xf32>
    %55 = vector.broadcast %54 : vector<1x32xf32> to vector<8x32xf32>
    %56 = arith.addf %51, %55 : vector<8x32xf32>
    %57 = arith.addf %56, %4 : vector<8x32xf32>
    %58 = arith.index_cast %arg1 : i32 to index
    %c0_24 = arith.constant 0 : index
    %c0_25 = arith.constant 0 : index
    %59 = vector.load %arg9[%58, %c0_24, %c0_25] : memref<2x1x32xf32, #tpu.memory_space<vmem>>, vector<1x1x32xf32>
    %60 = vector.shape_cast %59 : vector<1x1x32xf32> to vector<1x32xf32>
    %61 = arith.index_cast %arg1 : i32 to index
    %c0_26 = arith.constant 0 : index
    %c0_27 = arith.constant 0 : index
    %62 = vector.load %arg10[%61, %c0_26, %c0_27] : memref<2x1x32xf32, #tpu.memory_space<vmem>>, vector<1x1x32xf32>
    %63 = vector.shape_cast %62 : vector<1x1x32xf32> to vector<1x32xf32>
    %cst_28 = arith.constant dense<0.000000e+00> : vector<8xf32>
    %64 = vector.multi_reduction <add>, %57, %cst_28 [1] : vector<8x32xf32> to vector<8xf32>
    %65 = vector.shape_cast %64 : vector<8xf32> to vector<8x1xf32>
    %cst_29 = arith.constant 3.200000e+01 : f32
    %66 = vector.broadcast %cst_29 : f32 to vector<8x1xf32>
    %67 = arith.divf %65, %66 : vector<8x1xf32>
    %68 = vector.broadcast %67 : vector<8x1xf32> to vector<8x32xf32>
    %69 = arith.subf %57, %68 : vector<8x32xf32>
    %70 = arith.mulf %69, %69 : vector<8x32xf32>
    %cst_30 = arith.constant dense<0.000000e+00> : vector<8xf32>
    %71 = vector.multi_reduction <add>, %70, %cst_30 [1] : vector<8x32xf32> to vector<8xf32>
    %72 = vector.shape_cast %71 : vector<8xf32> to vector<8x1xf32>
    %cst_31 = arith.constant 3.200000e+01 : f32
    %73 = vector.broadcast %cst_31 : f32 to vector<8x1xf32>
    %74 = arith.divf %72, %73 : vector<8x1xf32>
    %75 = vector.broadcast %67 : vector<8x1xf32> to vector<8x32xf32>
    %76 = arith.subf %57, %75 : vector<8x32xf32>
    %cst_32 = arith.constant 9.99999974E-6 : f32
    %77 = vector.broadcast %cst_32 : f32 to vector<8x1xf32>
    %78 = arith.addf %74, %77 : vector<8x1xf32>
    %79 = math.rsqrt %78 : vector<8x1xf32>
    %80 = vector.broadcast %79 : vector<8x1xf32> to vector<8x32xf32>
    %81 = arith.mulf %76, %80 : vector<8x32xf32>
    %82 = vector.broadcast %60 : vector<1x32xf32> to vector<8x32xf32>
    %83 = arith.mulf %81, %82 : vector<8x32xf32>
    %84 = vector.broadcast %63 : vector<1x32xf32> to vector<8x32xf32>
    %85 = arith.addf %83, %84 : vector<8x32xf32>
    %86 = vector.broadcast %6 : vector<8x1xf32> to vector<8x32xf32>
    %87 = arith.mulf %85, %86 : vector<8x32xf32>
    %88 = arith.index_cast %arg1 : i32 to index
    %c0_33 = arith.constant 0 : index
    %c0_34 = arith.constant 0 : index
    %c0_35 = arith.constant 0 : index
    %89 = vector.load %arg11[%88, %c0_33, %c0_34, %c0_35] : memref<2x3x32x64xf32, #tpu.memory_space<vmem>>, vector<1x3x32x64xf32>
    %90 = vector.shape_cast %89 : vector<1x3x32x64xf32> to vector<3x32x64xf32>
    %91 = arith.index_cast %arg1 : i32 to index
    %c0_36 = arith.constant 0 : index
    %c0_37 = arith.constant 0 : index
    %92 = vector.load %arg12[%91, %c0_36, %c0_37] : memref<2x1x64xf32, #tpu.memory_space<vmem>>, vector<1x1x64xf32>
    %93 = vector.shape_cast %92 : vector<1x1x64xf32> to vector<1x64xf32>
    %c1_i32 = arith.constant 1 : i32
    %94 = tpu.dynamic_rotate %87 by %c1_i32 dim 0 : vector<8x32xf32>, i32 -> vector<8x32xf32>
    %95 = tpu.iota {dimensions = array<i32: 0>} : vector<8x32xi32>
    %c-1_i32 = arith.constant -1 : i32
    %96 = vector.broadcast %c-1_i32 : i32 to vector<8x32xi32>
    %97 = arith.addi %95, %96 : vector<8x32xi32>
    %c0_i32_38 = arith.constant 0 : i32
    %98 = vector.broadcast %c0_i32_38 : i32 to vector<8x32xi32>
    %99 = arith.cmpi sge, %97, %98 : vector<8x32xi32>
    %c-1_i32_39 = arith.constant -1 : i32
    %100 = vector.broadcast %c-1_i32_39 : i32 to vector<8x32xi32>
    %101 = arith.addi %95, %100 : vector<8x32xi32>
    %c8_i32 = arith.constant 8 : i32
    %102 = vector.broadcast %c8_i32 : i32 to vector<8x32xi32>
    %103 = arith.cmpi slt, %101, %102 : vector<8x32xi32>
    %104 = arith.andi %99, %103 : vector<8x32xi1>
    %cst_40 = arith.constant 0.000000e+00 : f32
    %105 = vector.broadcast %cst_40 : f32 to vector<8x32xf32>
    %106 = arith.select %104, %94, %105 : vector<8x32xi1>, vector<8x32xf32>
    %107 = vector.extract_strided_slice %90 {offsets = [0, 0, 0], sizes = [1, 32, 64], strides = [1, 1, 1]} : vector<3x32x64xf32> to vector<1x32x64xf32>
    %108 = vector.shape_cast %107 : vector<1x32x64xf32> to vector<32x64xf32>
    %cst_41 = arith.constant dense<0.000000e+00> : vector<8x64xf32>
    %109 = tpu.matmul %106, %108, %cst_41 {dimension_numbers = #tpu.dot_dimension_numbers<[1], [0], [0], [1], [0, 0, 1, 1], [], []>} : vector<8x32xf32>, vector<32x64xf32>, vector<8x64xf32> -> vector<8x64xf32>
    %110 = vector.broadcast %93 : vector<1x64xf32> to vector<8x64xf32>
    %111 = arith.addf %110, %109 : vector<8x64xf32>
    %112 = vector.extract_strided_slice %90 {offsets = [1, 0, 0], sizes = [1, 32, 64], strides = [1, 1, 1]} : vector<3x32x64xf32> to vector<1x32x64xf32>
    %113 = vector.shape_cast %112 : vector<1x32x64xf32> to vector<32x64xf32>
    %cst_42 = arith.constant dense<0.000000e+00> : vector<8x64xf32>
    %114 = tpu.matmul %87, %113, %cst_42 {dimension_numbers = #tpu.dot_dimension_numbers<[1], [0], [0], [1], [0, 0, 1, 1], [], []>} : vector<8x32xf32>, vector<32x64xf32>, vector<8x64xf32> -> vector<8x64xf32>
    %115 = arith.addf %111, %114 : vector<8x64xf32>
    %c7_i32 = arith.constant 7 : i32
    %116 = tpu.dynamic_rotate %87 by %c7_i32 dim 0 : vector<8x32xf32>, i32 -> vector<8x32xf32>
    %117 = tpu.iota {dimensions = array<i32: 0>} : vector<8x32xi32>
    %c1_i32_43 = arith.constant 1 : i32
    %118 = vector.broadcast %c1_i32_43 : i32 to vector<8x32xi32>
    %119 = arith.addi %117, %118 : vector<8x32xi32>
    %c0_i32_44 = arith.constant 0 : i32
    %120 = vector.broadcast %c0_i32_44 : i32 to vector<8x32xi32>
    %121 = arith.cmpi sge, %119, %120 : vector<8x32xi32>
    %c1_i32_45 = arith.constant 1 : i32
    %122 = vector.broadcast %c1_i32_45 : i32 to vector<8x32xi32>
    %123 = arith.addi %117, %122 : vector<8x32xi32>
    %c8_i32_46 = arith.constant 8 : i32
    %124 = vector.broadcast %c8_i32_46 : i32 to vector<8x32xi32>
    %125 = arith.cmpi slt, %123, %124 : vector<8x32xi32>
    %126 = arith.andi %121, %125 : vector<8x32xi1>
    %cst_47 = arith.constant 0.000000e+00 : f32
    %127 = vector.broadcast %cst_47 : f32 to vector<8x32xf32>
    %128 = arith.select %126, %116, %127 : vector<8x32xi1>, vector<8x32xf32>
    %129 = vector.extract_strided_slice %90 {offsets = [2, 0, 0], sizes = [1, 32, 64], strides = [1, 1, 1]} : vector<3x32x64xf32> to vector<1x32x64xf32>
    %130 = vector.shape_cast %129 : vector<1x32x64xf32> to vector<32x64xf32>
    %cst_48 = arith.constant dense<0.000000e+00> : vector<8x64xf32>
    %131 = tpu.matmul %128, %130, %cst_48 {dimension_numbers = #tpu.dot_dimension_numbers<[1], [0], [0], [1], [0, 0, 1, 1], [], []>} : vector<8x32xf32>, vector<32x64xf32>, vector<8x64xf32> -> vector<8x64xf32>
    %132 = arith.addf %115, %131 : vector<8x64xf32>
    %cst_49 = arith.constant 0.000000e+00 : f32
    %133 = vector.broadcast %cst_49 : f32 to vector<8x64xf32>
    %134 = arith.maximumf %132, %133 : vector<8x64xf32>
    %135 = arith.index_cast %arg1 : i32 to index
    %c0_50 = arith.constant 0 : index
    %c0_51 = arith.constant 0 : index
    %c0_52 = arith.constant 0 : index
    %136 = vector.load %arg13[%135, %c0_50, %c0_51, %c0_52] : memref<2x3x64x32xf32, #tpu.memory_space<vmem>>, vector<1x3x64x32xf32>
    %137 = vector.shape_cast %136 : vector<1x3x64x32xf32> to vector<3x64x32xf32>
    %138 = arith.index_cast %arg1 : i32 to index
    %c0_53 = arith.constant 0 : index
    %c0_54 = arith.constant 0 : index
    %139 = vector.load %arg14[%138, %c0_53, %c0_54] : memref<2x1x32xf32, #tpu.memory_space<vmem>>, vector<1x1x32xf32>
    %140 = vector.shape_cast %139 : vector<1x1x32xf32> to vector<1x32xf32>
    %c1_i32_55 = arith.constant 1 : i32
    %141 = tpu.dynamic_rotate %134 by %c1_i32_55 dim 0 : vector<8x64xf32>, i32 -> vector<8x64xf32>
    %142 = tpu.iota {dimensions = array<i32: 0>} : vector<8x64xi32>
    %c-1_i32_56 = arith.constant -1 : i32
    %143 = vector.broadcast %c-1_i32_56 : i32 to vector<8x64xi32>
    %144 = arith.addi %142, %143 : vector<8x64xi32>
    %c0_i32_57 = arith.constant 0 : i32
    %145 = vector.broadcast %c0_i32_57 : i32 to vector<8x64xi32>
    %146 = arith.cmpi sge, %144, %145 : vector<8x64xi32>
    %c-1_i32_58 = arith.constant -1 : i32
    %147 = vector.broadcast %c-1_i32_58 : i32 to vector<8x64xi32>
    %148 = arith.addi %142, %147 : vector<8x64xi32>
    %c8_i32_59 = arith.constant 8 : i32
    %149 = vector.broadcast %c8_i32_59 : i32 to vector<8x64xi32>
    %150 = arith.cmpi slt, %148, %149 : vector<8x64xi32>
    %151 = arith.andi %146, %150 : vector<8x64xi1>
    %cst_60 = arith.constant 0.000000e+00 : f32
    %152 = vector.broadcast %cst_60 : f32 to vector<8x64xf32>
    %153 = arith.select %151, %141, %152 : vector<8x64xi1>, vector<8x64xf32>
    %154 = vector.extract_strided_slice %137 {offsets = [0, 0, 0], sizes = [1, 64, 32], strides = [1, 1, 1]} : vector<3x64x32xf32> to vector<1x64x32xf32>
    %155 = vector.shape_cast %154 : vector<1x64x32xf32> to vector<64x32xf32>
    %cst_61 = arith.constant dense<0.000000e+00> : vector<8x32xf32>
    %156 = tpu.matmul %153, %155, %cst_61 {dimension_numbers = #tpu.dot_dimension_numbers<[1], [0], [0], [1], [0, 0, 1, 1], [], []>} : vector<8x64xf32>, vector<64x32xf32>, vector<8x32xf32> -> vector<8x32xf32>
    %157 = vector.broadcast %140 : vector<1x32xf32> to vector<8x32xf32>
    %158 = arith.addf %157, %156 : vector<8x32xf32>
    %159 = vector.extract_strided_slice %137 {offsets = [1, 0, 0], sizes = [1, 64, 32], strides = [1, 1, 1]} : vector<3x64x32xf32> to vector<1x64x32xf32>
    %160 = vector.shape_cast %159 : vector<1x64x32xf32> to vector<64x32xf32>
    %cst_62 = arith.constant dense<0.000000e+00> : vector<8x32xf32>
    %161 = tpu.matmul %134, %160, %cst_62 {dimension_numbers = #tpu.dot_dimension_numbers<[1], [0], [0], [1], [0, 0, 1, 1], [], []>} : vector<8x64xf32>, vector<64x32xf32>, vector<8x32xf32> -> vector<8x32xf32>
    %162 = arith.addf %158, %161 : vector<8x32xf32>
    %c7_i32_63 = arith.constant 7 : i32
    %163 = tpu.dynamic_rotate %134 by %c7_i32_63 dim 0 : vector<8x64xf32>, i32 -> vector<8x64xf32>
    %164 = tpu.iota {dimensions = array<i32: 0>} : vector<8x64xi32>
    %c1_i32_64 = arith.constant 1 : i32
    %165 = vector.broadcast %c1_i32_64 : i32 to vector<8x64xi32>
    %166 = arith.addi %164, %165 : vector<8x64xi32>
    %c0_i32_65 = arith.constant 0 : i32
    %167 = vector.broadcast %c0_i32_65 : i32 to vector<8x64xi32>
    %168 = arith.cmpi sge, %166, %167 : vector<8x64xi32>
    %c1_i32_66 = arith.constant 1 : i32
    %169 = vector.broadcast %c1_i32_66 : i32 to vector<8x64xi32>
    %170 = arith.addi %164, %169 : vector<8x64xi32>
    %c8_i32_67 = arith.constant 8 : i32
    %171 = vector.broadcast %c8_i32_67 : i32 to vector<8x64xi32>
    %172 = arith.cmpi slt, %170, %171 : vector<8x64xi32>
    %173 = arith.andi %168, %172 : vector<8x64xi1>
    %cst_68 = arith.constant 0.000000e+00 : f32
    %174 = vector.broadcast %cst_68 : f32 to vector<8x64xf32>
    %175 = arith.select %173, %163, %174 : vector<8x64xi1>, vector<8x64xf32>
    %176 = vector.extract_strided_slice %137 {offsets = [2, 0, 0], sizes = [1, 64, 32], strides = [1, 1, 1]} : vector<3x64x32xf32> to vector<1x64x32xf32>
    %177 = vector.shape_cast %176 : vector<1x64x32xf32> to vector<64x32xf32>
    %cst_69 = arith.constant dense<0.000000e+00> : vector<8x32xf32>
    %178 = tpu.matmul %175, %177, %cst_69 {dimension_numbers = #tpu.dot_dimension_numbers<[1], [0], [0], [1], [0, 0, 1, 1], [], []>} : vector<8x64xf32>, vector<64x32xf32>, vector<8x32xf32> -> vector<8x32xf32>
    %179 = arith.addf %162, %178 : vector<8x32xf32>
    %180 = arith.addf %179, %87 : vector<8x32xf32>
    %181 = arith.index_cast %arg1 : i32 to index
    %c0_70 = arith.constant 0 : index
    %c0_71 = arith.constant 0 : index
    %182 = vector.load %arg15[%181, %c0_70, %c0_71] : memref<2x1x32xf32, #tpu.memory_space<vmem>>, vector<1x1x32xf32>
    %183 = vector.shape_cast %182 : vector<1x1x32xf32> to vector<1x32xf32>
    %184 = arith.index_cast %arg1 : i32 to index
    %c0_72 = arith.constant 0 : index
    %c0_73 = arith.constant 0 : index
    %185 = vector.load %arg16[%184, %c0_72, %c0_73] : memref<2x1x32xf32, #tpu.memory_space<vmem>>, vector<1x1x32xf32>
    %186 = vector.shape_cast %185 : vector<1x1x32xf32> to vector<1x32xf32>
    %cst_74 = arith.constant dense<0.000000e+00> : vector<8xf32>
    %187 = vector.multi_reduction <add>, %180, %cst_74 [1] : vector<8x32xf32> to vector<8xf32>
    %188 = vector.shape_cast %187 : vector<8xf32> to vector<8x1xf32>
    %cst_75 = arith.constant 3.200000e+01 : f32
    %189 = vector.broadcast %cst_75 : f32 to vector<8x1xf32>
    %190 = arith.divf %188, %189 : vector<8x1xf32>
    %191 = vector.broadcast %190 : vector<8x1xf32> to vector<8x32xf32>
    %192 = arith.subf %180, %191 : vector<8x32xf32>
    %193 = arith.mulf %192, %192 : vector<8x32xf32>
    %cst_76 = arith.constant dense<0.000000e+00> : vector<8xf32>
    %194 = vector.multi_reduction <add>, %193, %cst_76 [1] : vector<8x32xf32> to vector<8xf32>
    %195 = vector.shape_cast %194 : vector<8xf32> to vector<8x1xf32>
    %cst_77 = arith.constant 3.200000e+01 : f32
    %196 = vector.broadcast %cst_77 : f32 to vector<8x1xf32>
    %197 = arith.divf %195, %196 : vector<8x1xf32>
    %198 = vector.broadcast %190 : vector<8x1xf32> to vector<8x32xf32>
    %199 = arith.subf %180, %198 : vector<8x32xf32>
    %cst_78 = arith.constant 9.99999974E-6 : f32
    %200 = vector.broadcast %cst_78 : f32 to vector<8x1xf32>
    %201 = arith.addf %197, %200 : vector<8x1xf32>
    %202 = math.rsqrt %201 : vector<8x1xf32>
    %203 = vector.broadcast %202 : vector<8x1xf32> to vector<8x32xf32>
    %204 = arith.mulf %199, %203 : vector<8x32xf32>
    %205 = vector.broadcast %183 : vector<1x32xf32> to vector<8x32xf32>
    %206 = arith.mulf %204, %205 : vector<8x32xf32>
    %207 = vector.broadcast %186 : vector<1x32xf32> to vector<8x32xf32>
    %208 = arith.addf %206, %207 : vector<8x32xf32>
    %209 = vector.broadcast %6 : vector<8x1xf32> to vector<8x32xf32>
    %210 = arith.mulf %208, %209 : vector<8x32xf32>
    %c0_79 = arith.constant 0 : index
    %c0_80 = arith.constant 0 : index
    %c0_81 = arith.constant 0 : index
    %211 = vector.load %arg17[%c0_79, %c0_80, %c0_81] : memref<1x8x32xf32, #tpu.memory_space<vmem>>, vector<1x8x32xf32>
    %212 = vector.shape_cast %211 : vector<1x8x32xf32> to vector<8x32xf32>
    %213 = vector.shape_cast %210 : vector<8x32xf32> to vector<1x8x32xf32>
    tpu.vector_store %arg17[%c0_79, %c0_80, %c0_81], %213 {strides = array<i32>} : memref<1x8x32xf32, #tpu.memory_space<vmem>>, vector<1x8x32xf32>,
    return
  }
  func.func @transform_0(%arg0: i32, %arg1: i32) -> (i32, i32, i32) {
    %c0_i32 = arith.constant 0 : i32
    %c0_i32_0 = arith.constant 0 : i32
    %c0_i32_1 = arith.constant 0 : i32
    return %arg0, %c0_i32, %c0_i32_0 : i32, i32, i32
  }
  func.func @transform_1(%arg0: i32, %arg1: i32) -> (i32, i32, i32) {
    %c0_i32 = arith.constant 0 : i32
    %c0_i32_0 = arith.constant 0 : i32
    %c0_i32_1 = arith.constant 0 : i32
    return %arg0, %c0_i32, %c0_i32_0 : i32, i32, i32
  }
  func.func @transform_2(%arg0: i32, %arg1: i32) -> (i32, i32, i32) {
    %c0_i32 = arith.constant 0 : i32
    %c0_i32_0 = arith.constant 0 : i32
    %c0_i32_1 = arith.constant 0 : i32
    return %arg0, %c0_i32, %c0_i32_0 : i32, i32, i32
  }
  func.func @transform_3(%arg0: i32, %arg1: i32) -> (i32, i32, i32) {
    %c0_i32 = arith.constant 0 : i32
    %c0_i32_0 = arith.constant 0 : i32
    %c0_i32_1 = arith.constant 0 : i32
    %c0_i32_2 = arith.constant 0 : i32
    return %c0_i32, %c0_i32_0, %c0_i32_1 : i32, i32, i32
  }
  func.func @transform_4(%arg0: i32, %arg1: i32) -> (i32, i32, i32) {
    %c0_i32 = arith.constant 0 : i32
    %c0_i32_0 = arith.constant 0 : i32
    %c0_i32_1 = arith.constant 0 : i32
    %c0_i32_2 = arith.constant 0 : i32
    return %c0_i32, %c0_i32_0, %c0_i32_1 : i32, i32, i32
  }
  func.func @transform_5(%arg0: i32, %arg1: i32) -> (i32, i32, i32) {
    %c0_i32 = arith.constant 0 : i32
    %c0_i32_0 = arith.constant 0 : i32
    %c0_i32_1 = arith.constant 0 : i32
    %c0_i32_2 = arith.constant 0 : i32
    return %c0_i32, %c0_i32_0, %c0_i32_1 : i32, i32, i32
  }
  func.func @transform_6(%arg0: i32, %arg1: i32) -> (i32, i32, i32) {
    %c0_i32 = arith.constant 0 : i32
    %c0_i32_0 = arith.constant 0 : i32
    %c0_i32_1 = arith.constant 0 : i32
    %c0_i32_2 = arith.constant 0 : i32
    return %c0_i32, %c0_i32_0, %c0_i32_1 : i32, i32, i32
  }
  func.func @transform_7(%arg0: i32, %arg1: i32) -> (i32, i32, i32) {
    %c0_i32 = arith.constant 0 : i32
    %c0_i32_0 = arith.constant 0 : i32
    %c0_i32_1 = arith.constant 0 : i32
    %c0_i32_2 = arith.constant 0 : i32
    return %c0_i32, %c0_i32_0, %c0_i32_1 : i32, i32, i32
  }
  func.func @transform_8(%arg0: i32, %arg1: i32) -> (i32, i32, i32) {
    %c0_i32 = arith.constant 0 : i32
    %c0_i32_0 = arith.constant 0 : i32
    %c0_i32_1 = arith.constant 0 : i32
    %c0_i32_2 = arith.constant 0 : i32
    return %c0_i32, %c0_i32_0, %c0_i32_1 : i32, i32, i32
  }
  func.func @transform_9(%arg0: i32, %arg1: i32) -> (i32, i32, i32, i32) {
    %c0_i32 = arith.constant 0 : i32
    %c0_i32_0 = arith.constant 0 : i32
    %c0_i32_1 = arith.constant 0 : i32
    %c0_i32_2 = arith.constant 0 : i32
    %c0_i32_3 = arith.constant 0 : i32
    return %c0_i32, %c0_i32_0, %c0_i32_1, %c0_i32_2 : i32, i32, i32, i32
  }
  func.func @transform_10(%arg0: i32, %arg1: i32) -> (i32, i32, i32) {
    %c0_i32 = arith.constant 0 : i32
    %c0_i32_0 = arith.constant 0 : i32
    %c0_i32_1 = arith.constant 0 : i32
    %c0_i32_2 = arith.constant 0 : i32
    return %c0_i32, %c0_i32_0, %c0_i32_1 : i32, i32, i32
  }
  func.func @transform_11(%arg0: i32, %arg1: i32) -> (i32, i32, i32, i32) {
    %c0_i32 = arith.constant 0 : i32
    %c0_i32_0 = arith.constant 0 : i32
    %c0_i32_1 = arith.constant 0 : i32
    %c0_i32_2 = arith.constant 0 : i32
    %c0_i32_3 = arith.constant 0 : i32
    return %c0_i32, %c0_i32_0, %c0_i32_1, %c0_i32_2 : i32, i32, i32, i32
  }
  func.func @transform_12(%arg0: i32, %arg1: i32) -> (i32, i32, i32) {
    %c0_i32 = arith.constant 0 : i32
    %c0_i32_0 = arith.constant 0 : i32
    %c0_i32_1 = arith.constant 0 : i32
    %c0_i32_2 = arith.constant 0 : i32
    return %c0_i32, %c0_i32_0, %c0_i32_1 : i32, i32, i32
  }
  func.func @transform_13(%arg0: i32, %arg1: i32) -> (i32, i32, i32) {
    %c0_i32 = arith.constant 0 : i32
    %c0_i32_0 = arith.constant 0 : i32
    %c0_i32_1 = arith.constant 0 : i32
    %c0_i32_2 = arith.constant 0 : i32
    return %c0_i32, %c0_i32_0, %c0_i32_1 : i32, i32, i32
  }
  func.func @transform_14(%arg0: i32, %arg1: i32) -> (i32, i32, i32) {
    %c0_i32 = arith.constant 0 : i32
    %c0_i32_0 = arith.constant 0 : i32
    %c0_i32_1 = arith.constant 0 : i32
    %c0_i32_2 = arith.constant 0 : i32
    return %c0_i32, %c0_i32_0, %c0_i32_1 : i32, i32, i32
  }
  func.func @transform_15(%arg0: i32, %arg1: i32) -> (i32, i32, i32) {
    %c0_i32 = arith.constant 0 : i32
    %c0_i32_0 = arith.constant 0 : i32
    %c0_i32_1 = arith.constant 0 : i32
    return %arg0, %c0_i32, %c0_i32_0 : i32, i32, i32
  }
}

</mosaic_0001>

<bundles_post_ra>
// kernel: tpu_custom_call.1
= control target key start
LH: loop header
LB: loop body
LE: loop exit
PB: predicated region body
PF: predicated region fallthrough
CT: control target
= control target key end

     0   :  { %s2306_s0 = inlined_call_operand.vmem [shape: f32[2,8,32], index: 0, kind: input, shape index: {}]   ;;  %s2307_s1 = inlined_call_operand.vmem [shape: f32[2,8,1], index: 1, kind: input, shape index: {}]   ;;  %s2308_s2 = inlined_call_operand.vmem [shape: f32[2,1,8], index: 2, kind: input, shape index: {}]   ;;  %s2309_s3 = inlined_call_operand.vmem [shape: f32[2,32,96], index: 3, kind: input, shape index: {}]   ;;  %s2310_s4 = inlined_call_operand.vmem [shape: f32[2,1,96], index: 4, kind: input, shape index: {}]   ;;  %s2311_s5 = inlined_call_operand.vmem [shape: f32[2,32,32], index: 5, kind: input, shape index: {}]   ;;  %s2312_s6 = inlined_call_operand.vmem [shape: f32[2,1,32], index: 6, kind: input, shape index: {}]   ;;  %s2313_s7 = inlined_call_operand.vmem [shape: f32[2,1,32], index: 7, kind: input, shape index: {}]   ;;  %s2314_s8 = inlined_call_operand.vmem [shape: f32[2,1,32], index: 8, kind: input, shape index: {}]   ;;  %s2315_s9 = inlined_call_operand.vmem [shape: f32[2,3,32,64], index: 9, kind: input, shape index: {}]   ;;  %s2316_s10 = inlined_call_operand.vmem [shape: f32[2,1,64], index: 10, kind: input, shape index: {}]   ;;  %s2317_s11 = inlined_call_operand.vmem [shape: f32[2,3,64,32], index: 11, kind: input, shape index: {}]   ;;  %s2318_s12 = inlined_call_operand.vmem [shape: f32[2,1,32], index: 12, kind: input, shape index: {}]   ;;  %s2319_s13 = inlined_call_operand.vmem [shape: f32[2,1,32], index: 13, kind: input, shape index: {}]   ;;  %s2320_s14 = inlined_call_operand.vmem [shape: f32[2,1,32], index: 14, kind: input, shape index: {}]   ;;  %s2321_s15 = inlined_call_operand.hbm [shape: f32[2,8,32], index: 15, kind: output, shape index: {}]  }
   0x1   :  { %2334 = sst [smem:[#allocation16_spill]] %s2321_s15 }
   0x2   :  { %20 = vsyncpa [#allocation3], 0 }
   0x3   :  { %22 = vsyncpa [#allocation3 + $0x1], 0  ;;  %s1863_s18 = smov 0   ;;  %s1865_s19 = smov 0  }
   0x4   :  { %s1867_s20 = smov 0   ;;  %s1869_s21 = smov 0  }
   0x5   :  { %s1871_s22 = smov 0   ;;  %s1873_s23 = smov 0  }
   0x6   :  { %s1875_s24 = smov 0   ;;  %s1877_s25 = smov 0  }
   0x7 LB: > { %2335 = sst [smem:[#allocation5_spill]] %s1745_s18  ;;  %s1543_s26 = sadd.s32 4294967295, %s1773_s25   ;;  %s1773_s25 = sphi %s1877_s25, %s28_s25   ;;  %s1769_s24 = sphi %s1875_s24, %s2360_s24   ;;  %s1765_s23 = sphi %s1873_s23, %s2359_s23   ;;  %s1761_s22 = sphi %s1871_s22, %s2358_s22   ;;  %s1757_s21 = sphi %s1869_s21, %s2357_s21   ;;  %s1753_s20 = sphi %s1867_s20, %s2356_s20   ;;  %s1749_s19 = sphi %s1865_s19, %s2355_s19   ;;  %s1745_s18 = sphi %s1863_s18, %s2354_s18  }
   0x8   : > { %2336 = sst [smem:[#allocation6_spill]] %s1749_s19  ;;  %s1544_s27 = sadd.s32 4294967294, %s1773_s25  }
   0x9   : > { %2337 = sst [smem:[#allocation7_spill]] %s1753_s20  ;;  %s37_s28 = sadd.s32 1, %s1765_s23 }
   0xa   : > { %2338 = sst [smem:[#allocation8_spill]] %s1765_s23  ;;  %p38_p0 = scmp.ge.s32.totalorder %s37_s28, 2 }
   0xb   : > { %2339 = sst [smem:[#allocation9_spill]] %s1769_s24  ;;  %s40_s29 = sadd.s32 1, %s1769_s24 }
   0xc   : > { %2340 = sst [smem:[#allocation10_spill]] %s1773_s25  ;;  %p387_p1 = scmp.ne.s32.totalorder %s1753_s20, %s1749_s19 }
   0xd   : > { %p388_p2 = scmp.eq.s32.totalorder %s1543_s26, 3  ;;  %s2362_s28 = smov (%p38_p0, %s37_s28), 0 }
   0xe   : > { %2341 = sst [smem:[#allocation11_spill]] %s2362_s28  ;;  %s2364_s29 = smov (!%p38_p0, %s40_s29), %s1769_s24 }
   0xf   : > { %p1912_p3 = por %p388_p2, %p387_p1  ;;  %p393_p4 = scmp.ne.s32.totalorder %s1749_s19, %s1745_s18 }
  0x10   : > { %p42_p5 = scmp.ge.s32.totalorder %s2364_s29, 2  ;;  %p394_p6 = scmp.eq.s32.totalorder %s1544_s27, 3 }
  0x11   : > { %s2342_s30 = scalar_select %p1912_p3, 1, 0 }
  0x12   : > { %p1547_p7 = scmp.ge.s32.totalorder %s1773_s25, 1  ;;  %p468_p8 = scmp.lt.s32.totalorder %s1773_s25, 5 }
  0x13   : > { %2343 = sst [smem:[#allocation12_spill]] %s2342_s30  ;;  %s2366_s29 = smov (%p42_p5, %s2364_s29), 0 }
  0x14   : > { %2344 = sst [smem:[#allocation13_spill]] %s2366_s29  ;;  %p1922_p9 = por %p394_p6, %p393_p4 }
  0x15   : > { %p469_p10 = pnand %p1547_p7, %p468_p8  ;;  %s374_s17 = ssub.s32 %s1769_s24, %s2366_s29 }
  0x16   : > { %s2345_s16 = scalar_select %p1922_p9, 1, 0 }
  0x17   : > { %s377_s26 = sadd.s32 1, %s1753_s20  ;;  %p375_p11 = scmp.eq.s32.totalorder %s374_s17, 0 }
  0x18   : > { %2346 = sst [smem:[#allocation14_spill]] %s2345_s16  ;;  %472 = sbr.rel (%p469_p10) target bundleno = 1899 (0x76b), region = 80 }
  0x19   : > { %s1930_s28 = scalar_select %p375_p11, %s1753_s20, %s377_s26  }
  0x1a   : > { %s519_s27 = sand.u32 (!%p469_p10), 1, %s1749_s19   ;;  %p522_p12 = scmp.lt.s32.totalorder (!%p469_p10), %s1761_s22, 1 }
  0x1b   : > { %2347 = sst [smem:[#allocation15_spill]] %s1930_s28  ;;  %s1548_s23 = sshll.u32 (!%p469_p10), %s519_s27, 3 }
  0x1c   : > { %s1952_s19 = scalar_lea.vmem (!%p469_p10), [#allocation2], %s1548_s23  ;;  %p1551_p13 = scmp.ne.s32.totalorder (!%p469_p10), %s1757_s21, 0 }
  0x1d   : > { %s1937_s18 = scalar_select %p522_p12, %s1761_s22, 1 }
  0x1e   : > { %536 = sbr.rel (%p1551_p13) target bundleno = 37 (0x25), region = 84 }
  0x1f   : > { %s1549_s16 = sshll.u32 %s1937_s18, 3  ;;  %s532_s17 = scalar_lea.vmem %s2308_s2, %s1937_s18 }
  0x20   : > { %s525_s28 = scalar_lea.vmem %s2306_s0, %s1549_s16  ;;  %s1950_s30 = scalar_lea.vmem %s2307_s1, %s1549_s16 }
  0x23   : > { %v537_v0 = vld [vmem:[%s525_s28] sm:$0xff]  ;;  %vm538_vm0 = vcmask 261120  }
  0x24   : > { %539 = vst.msk [vmem:[%s1952_s19] sm:$0xff] %vm538_vm0, %v537_v0 }
  0x25 PF: > { %s1552_s24 = sshll.u32 %s1757_s21, 5  ;;  %s549_s15 = scalar_lea.vmem %s2310_s4, %s1757_s21  ;;  %vm554_vm1 = vcmask 261120   ;;  %v1778_v11 = vmov 1983009808   ;;  %vm583_vm2 = vcmask 1047556   ;;  %vm865_vm3 = vcmask 130048  }
  0x26   : > { %s544_s16 = scalar_lea.vmem %s2309_s3, %s1552_s24  ;;  %v1657_v6 = vld [vmem:[%s549_s15] ss:$0 sm:$0xff]  ;;  %s1775_s28 = smov 112   ;;  %v586_v12 = vunpack.c.l.s4 %v1778_v11  ;;  %v1779_v20 = vmov 1934713408   ;;  %vm924_vm6 = vcmask 64512  }
  0x27   : > { %v548_v1 = vld [vmem:[%s544_s16 + $0x18] sm:$0xff]  ;;  %v547_v2 = vld [vmem:[%s544_s16 + $0x10] sm:$0xff]  ;;  %v546_v3 = vld [vmem:[%s544_s16 + $0x8] sm:$0xff]  ;;  %s1776_s26 = smov 96   ;;  %s1777_s25 = smov 64   ;;  %v608_v21 = vunpack.c.l.s4 %v1779_v20  ;;  %vm1305_vm13 = vcmask 523264  }
  0x28   : > { %570 = vmatpush.msra.mxu0 %v548_v1  ;;  %v545_v4 = vld [vmem:[%s544_s16] sm:$0xff]  ;;  %v1971_v14 = vunpack.c.0.s8 %v586_v12  ;;  %s1093_s20 = scalar_lea.vmem %s2312_s6, %s1757_s21  ;;  %s1122_s15 = scalar_lea.vmem %s2313_s7, %s1757_s21 }
  0x29   : > { %v1979_v25 = vunpack.c.0.s8 %v608_v21  ;;  %s1169_s23 = smul.u32 96, %s1757_s21 }
  0x2a   : > { %571 = vmatpush.msra.mxu0 %v547_v2 }
  0x2b   : > { %v1967_v5 = vld [vmem:[%s1952_s19] sm:$0xff] }
  0x2c   : > { %572 = vmatpush.msra.mxu0 %v546_v3 }
  0x2e   : > { %573 = vmatpush.msra.mxu0 %v545_v4 }
  0x2f   : > { %1553 = vmatmul.msk.f32.vlgmr.msra.gmra.mxu0 %vm554_vm1, %v1967_v5 }
  0xac   : > { %v575_v7 = vpop.f32.mrf.mxu0 }
  0xad   : > { %v576_v8 = vadd.f32 %v1657_v6, %v575_v7 }
  0xaf   : > { %579 = vrot.lane.b32.xlu0 %v576_v8, %s1775_s28  ;;  %v582_v13 = vrot.slane %v576_v8, 4  ;;  %v588_v17 = vperm.slane %v576_v8, %v1971_v14  ;;  %s1088_s28 = scalar_lea.vmem %s2311_s5, %s1552_s24  ;;  %s1781_s24 = smov 16  }
  0xb1   : > { %v584_v16 = vsel %vm583_vm2, 0.0, %v582_v13  ;;  %v605_v24 = vrot.slane %v588_v17, 4 }
  0xb2   : > { %v592_v19 = vperm.slane %v584_v16, %v1971_v14 }
  0xb4   : > { %v617_v26 = vrot.slane %v592_v19, 4 }
  0xb7   : > { %673 = vrot.lane.b32.xlu0 %v576_v8, %s1776_s26 }
 0x121   : > { %v580_v9 = vpop.permute.xlu0 %579 }
 0x122   : > { %675 = vrot.lane.b32.xlu1 %v580_v9, %s1776_s26  ;;  %v1650_v10 = vpack.i.bf16 %v580_v9, %v576_v8  ;;  %v593_v15 = vrot.slane %v580_v9, 4  ;;  %v598_v22 = vperm.slane %v580_v9, %v1971_v14  ;;  %s1275_s26 = smul.u32 192, %s1757_s21 }
 0x124   : > { %v594_v18 = vsel %vm583_vm2, 0.0, %v593_v15  ;;  %v603_v27 = vrot.slane %v598_v22, 4  ;;  %v606_v28 = vsel %vm583_vm2, %v598_v22, %v605_v24  ;;  %s2166_s29 = scalar_lea.vmem %s2317_s11, %s1275_s26 }
 0x125   : > { %v602_v23 = vperm.slane %v594_v18, %v1971_v14  ;;  %v614_v31 = vperm.slane %v606_v28, %v1979_v25 }
 0x126   : > { %v604_v32 = vsel %vm583_vm2, %v603_v27, %v588_v17 }
 0x127   : > { %v615_v29 = vrot.slane %v602_v23, 4  ;;  %v618_v30 = vsel %vm583_vm2, %v602_v23, %v617_v26  ;;  %v610_v35 = vperm.slane %v604_v32, %v1979_v25  ;;  %v629_v36 = vrot.slane %v614_v31, 4 }
 0x128   : > { %v626_v33 = vperm.slane %v618_v30, %v1979_v25 }
 0x129   : > { %v616_v34 = vsel %vm583_vm2, %v615_v29, %v592_v19  ;;  %v627_v39 = vrot.slane %v610_v35, 4  ;;  %v630_v40 = vsel %vm583_vm2, 0.0, %v629_v36  ;;  %v674_v43 = vpop.permute.xlu0 %673  ;;  %v635_v60 = vsel %vm583_vm2, %v629_v36, %v610_v35 }
 0x12a   : > { %1651 = vrot.lane.b32.xlu1 %v1650_v10, %s1777_s25  ;;  %v622_v37 = vperm.slane %v616_v34, %v1979_v25  ;;  %v633_v38 = vrot.slane %v626_v33, 4  ;;  %v640_v44 = vrot.slane %v630_v40, 4  ;;  %v679_v47 = vrot.slane %v674_v43, 4  ;;  %s1301_s25 = scalar_lea.vmem %s2318_s12, %s1757_s21 }
 0x12b   : > { %v628_v45 = vsel %vm583_vm2, 0.0, %v627_v39  ;;  %v684_v52 = vperm.slane %v674_v43, %v1971_v14  ;;  %v639_v8 = vperm.slane %v635_v60, %v1971_v14 }
 0x12c   : > { %v634_v41 = vsel %vm583_vm2, 0.0, %v633_v38  ;;  %v631_v42 = vrot.slane %v622_v37, 4  ;;  %v641_v49 = vsel %vm583_vm2, %v640_v44, %v628_v45  ;;  %v680_v51 = vsel %vm583_vm2, 0.0, %v679_v47 }
 0x12d   : > { %v651_v46 = vrot.slane %v634_v41, 4  ;;  %v645_v53 = vperm.slane %v641_v49, %v1971_v14  ;;  %v688_v55 = vperm.slane %v680_v51, %v1971_v14  ;;  %v701_v57 = vrot.slane %v684_v52, 4 }
 0x12e   : > { %v632_v48 = vsel %vm583_vm2, 0.0, %v631_v42  ;;  %v646_v61 = vsel %vm583_vm2, %v633_v38, %v622_v37 }
 0x12f   : > { %v652_v50 = vsel %vm583_vm2, %v651_v46, %v632_v48  ;;  %v657_v62 = vrot.slane %v645_v53, 4  ;;  %v713_v3 = vrot.slane %v688_v55, 4  ;;  %v650_v9 = vperm.slane %v646_v61, %v1971_v14 }
 0x130   : > { %v656_v54 = vperm.slane %v652_v50, %v1971_v14 }
 0x131   : > { %v658_v16 = vsel %vm583_vm2, %v657_v62, %v639_v8 }
 0x132   : > { %v663_v2 = vrot.slane %v656_v54, 4  ;;  %v2020_v29 = vperm.slane %v658_v16, %v1979_v25 }
 0x134   : > { %v664_v17 = vsel %vm583_vm2, %v663_v2, %v650_v9  ;;  %v671_v9 = vrot.slane %v2020_v29, 4 }
 0x135   : > { %v2023_v30 = vperm.slane %v664_v17, %v1979_v25 }
 0x137   : > { %v669_v17 = vrot.slane %v2023_v30, 4 }
 0x194   : > { %v676_v56 = vpop.permute.xlu1 %675 }
 0x195   : > { %v689_v58 = vrot.slane %v676_v56, 4  ;;  %v694_v59 = vperm.slane %v676_v56, %v1971_v14 }
 0x197   : > { %v690_v63 = vsel %vm583_vm2, 0.0, %v689_v58  ;;  %v699_v0 = vrot.slane %v694_v59, 4  ;;  %v702_v1 = vsel %vm583_vm2, %v694_v59, %v701_v57 }
 0x198   : > { %v698_v4 = vperm.slane %v690_v63, %v1971_v14  ;;  %v710_v6 = vperm.slane %v702_v1, %v1979_v25 }
 0x199   : > { %v700_v7 = vsel %vm583_vm2, %v699_v0, %v684_v52 }
 0x19a   : > { %v706_v10 = vperm.slane %v700_v7, %v1979_v25  ;;  %v711_v11 = vrot.slane %v698_v4, 4  ;;  %v714_v12 = vsel %vm583_vm2, %v698_v4, %v713_v3  ;;  %v725_v13 = vrot.slane %v710_v6, 4 }
 0x19b   : > { %v722_v15 = vperm.slane %v714_v12, %v1979_v25 }
 0x19c   : > { %v712_v18 = vsel %vm583_vm2, %v711_v11, %v688_v55  ;;  %v723_v19 = vrot.slane %v706_v10, 4  ;;  %v726_v20 = vsel %vm583_vm2, 0.0, %v725_v13  ;;  %v1652_v21 = vpop.permute.xlu1 %1651  ;;  %v731_v43 = vsel %vm583_vm2, %v725_v13, %v706_v10 }
 0x19d   : > { %v718_v22 = vperm.slane %v712_v18, %v1979_v25  ;;  %v729_v23 = vrot.slane %v722_v15, 4  ;;  %v736_v24 = vrot.slane %v726_v20, 4  ;;  %v1654_v26 = vunpack.i.h.bf16 %v1652_v21 }
 0x19e   : > { %v724_v27 = vsel %vm583_vm2, 0.0, %v723_v19  ;;  %v1653_v28 = vunpack.i.l.bf16 %v1652_v21  ;;  %v735_v57 = vperm.slane %v731_v43, %v1971_v14 }
 0x19f   : > { %v727_v31 = vrot.slane %v718_v22, 4  ;;  %v730_v32 = vsel %vm583_vm2, 0.0, %v729_v23  ;;  %v785_v33 = vrot.slane %v1654_v26, 4  ;;  %v790_v34 = vperm.slane %v1654_v26, %v1971_v14 }
 0x1a0   : > { %v747_v35 = vrot.slane %v730_v32, 4  ;;  %v775_v36 = vrot.slane %v1653_v28, 4  ;;  %v780_v37 = vperm.slane %v1653_v28, %v1971_v14  ;;  %v737_v38 = vsel %vm583_vm2, %v736_v24, %v724_v27 }
 0x1a1   : > { %v786_v39 = vsel %vm583_vm2, 0.0, %v785_v33  ;;  %v795_v40 = vrot.slane %v790_v34, 4  ;;  %v728_v41 = vsel %vm583_vm2, 0.0, %v727_v31  ;;  %v741_v42 = vperm.slane %v737_v38, %v1971_v14 }
 0x1a2   : > { %v794_v44 = vperm.slane %v786_v39, %v1971_v14  ;;  %v776_v45 = vsel %vm583_vm2, 0.0, %v775_v36  ;;  %v797_v46 = vrot.slane %v780_v37, 4  ;;  %v742_v49 = vsel %vm583_vm2, %v729_v23, %v718_v22 }
 0x1a3   : > { %v784_v47 = vperm.slane %v776_v45, %v1971_v14  ;;  %v796_v48 = vsel %vm583_vm2, %v795_v40, %v780_v37  ;;  %v748_v50 = vsel %vm583_vm2, %v747_v35, %v728_v41  ;;  %v753_v58 = vrot.slane %v741_v42, 4  ;;  %v542_v45 = vld [vmem:[%s532_s17] sm:$0x1] }
 0x1a4   : > { %v807_v51 = vrot.slane %v794_v44, 4  ;;  %v798_v52 = vsel %vm583_vm2, %v790_v34, %v797_v46  ;;  %v802_v53 = vperm.slane %v796_v48, %v1979_v25  ;;  %v752_v54 = vperm.slane %v748_v50, %v1971_v14 }
 0x1a5   : > { %v806_v55 = vperm.slane %v798_v52, %v1979_v25  ;;  %v809_v56 = vrot.slane %v784_v47, 4  ;;  %v746_v61 = vperm.slane %v742_v49, %v1971_v14  ;;  %v754_v2 = vsel %vm583_vm2, %v753_v58, %v735_v57 }
 0x1a6   : > { %v808_v59 = vsel %vm583_vm2, %v807_v51, %v784_v47  ;;  %v819_v60 = vrot.slane %v802_v53, 4  ;;  %v759_v62 = vrot.slane %v752_v54, 4  ;;  %v758_v4 = vperm.slane %v754_v2, %v1979_v25 }
 0x1a7   : > { %v810_v63 = vsel %vm583_vm2, %v794_v44, %v809_v56  ;;  %v814_v0 = vperm.slane %v808_v59, %v1979_v25  ;;  %v821_v1 = vrot.slane %v806_v55, 4  ;;  %v672_v26 = vsel %vm583_vm2, %v2023_v30, %v671_v9  ;;  %v1090_v9 = vld [vmem:[%s1088_s28 + $0x8] sm:$0xff] }
 0x1a8   : > { %v818_v3 = vperm.slane %v810_v63, %v1979_v25  ;;  %v760_v6 = vsel %vm583_vm2, %v759_v62, %v746_v61  ;;  %v767_v13 = vrot.slane %v758_v4, 4  ;;  %v820_v15 = vsel %vm583_vm2, 0.0, %v819_v60 }
 0x1a9   : > { %v822_v7 = vsel %vm583_vm2, 0.0, %v821_v1  ;;  %v764_v8 = vperm.slane %v760_v6, %v1979_v25  ;;  %v823_v10 = vrot.slane %v814_v0, 4  ;;  %v827_v20 = vsel %vm583_vm2, %v821_v1, %v802_v53  ;;  %v1092_v6 = vld [vmem:[%s1088_s28 + $0x18] sm:$0xff] }
 0x1aa   : > { %v825_v11 = vrot.slane %v818_v3, 4  ;;  %v832_v12 = vrot.slane %v822_v7, 4  ;;  %v831_v28 = vperm.slane %v827_v20, %v1971_v14  ;;  %v670_v34 = vsel %vm583_vm2, %v669_v17, %v2020_v29  ;;  %v1091_v7 = vld [vmem:[%s1088_s28 + $0x10] sm:$0xff] }
 0x1ab   : > { %v765_v16 = vrot.slane %v764_v8, 4  ;;  %v768_v19 = vsel %vm583_vm2, %v764_v8, %v767_v13  ;;  %v824_v27 = vsel %vm583_vm2, 0.0, %v823_v10  ;;  %v1780_v44 = vmov 0   ;;  %v1089_v10 = vld [vmem:[%s1088_s28] sm:$0xff]  ;;  %s1183_s28 = scalar_lea.vmem %s2316_s10, %s1757_s21 }
 0x1ac   : > { %v826_v18 = vsel %vm583_vm2, 0.0, %v825_v11  ;;  %v833_v21 = vsel %vm583_vm2, %v832_v12, %v820_v15  ;;  %1556 = vmatpush.xpose.msk.msra.mxu2 %vm865_vm3, %v768_v19  ;;  %v838_v31 = vsel %vm583_vm2, %v825_v11, %v814_v0  ;;  %1655 = vset.pattern.permute.xlu1 %v1780_v44  ;;  %vm918_vm4 = vcmp.gt.f32.partialorder %v542_v45, 0.5 }
 0x1ad   : > { %v843_v22 = vrot.slane %v826_v18, 4  ;;  %v766_v23 = vsel %vm583_vm2, %v765_v16, %v758_v4  ;;  %v837_v24 = vperm.slane %v833_v21, %v1971_v14  ;;  %v842_v36 = vperm.slane %v838_v31, %v1971_v14  ;;  %1656 = vset.pattern.permute.xlu0 %v1780_v44 }
 0x1ae   : > { %1554 = vmatpush.xpose.msk.msra.mxu1 %vm865_vm3, %v766_v23  ;;  %v919_v46 = vsel %vm918_vm4, 1, %v1780_v44 }
 0x1af   : > { %v844_v32 = vsel %vm583_vm2, %v843_v22, %v824_v27  ;;  %v849_v33 = vrot.slane %v837_v24, 4  ;;  %1557 = vmatmul.msk.f32.vlgmr.msra.gmra.mxu2 %vm865_vm3, %v672_v26  ;;  %v920_v47 = vperm.slane %v919_v46, 0 }
 0x1b0   : > { %v848_v35 = vperm.slane %v844_v32, %v1971_v14 }
 0x1b1   : > { %1555 = vmatmul.msk.f32.vlgmr.msra.gmra.mxu1 %vm865_vm3, %v670_v34  ;;  %v850_v30 = vsel %vm583_vm2, %v849_v33, %v831_v28  ;;  %vm921_vm5 = vcmp.eq.s32.totalorder %v920_v47, 1 }
 0x1b2   : > { %v854_v37 = vperm.slane %v850_v30, %v1979_v25  ;;  %v855_v38 = vrot.slane %v848_v35, 4  ;;  %1113 = vmatpush.msrb.mxu1 %v1092_v6  ;;  %v541_v6 = vld [vmem:[%s1950_s30] sm:$0xff] }
 0x1b4   : > { %v856_v39 = vsel %vm583_vm2, %v855_v38, %v842_v36  ;;  %v863_v41 = vrot.slane %v854_v37, 4  ;;  %1114 = vmatpush.msrb.mxu1 %v1091_v7 }
 0x1b5   : > { %v860_v40 = vperm.slane %v856_v39, %v1979_v25 }
 0x1b6   : > { %1115 = vmatpush.msrb.mxu1 %v1090_v9 }
 0x1b7   : > { %v861_v42 = vrot.slane %v860_v40, 4  ;;  %v864_v43 = vsel %vm583_vm2, %v860_v40, %v863_v41 }
 0x1b8   : > { %1116 = vmatpush.msrb.mxu1 %v1089_v10 }
 0x1b9   : > { %v862_v29 = vsel %vm583_vm2, %v861_v42, %v854_v37 }
 0x1ba   : > { %963 = vmatpush.msra.mxu3 %v862_v29 }
 0x1bc   : > { %986 = vmatpush.msrb.mxu3 %v864_v43 }
 0x22e   : > { %v889_v48 = vpop.f32.mrf.mxu1 }
 0x22f   : > { %v922_v49 = vsel %vm921_vm5, -1e+30, %v889_v48 }
 0x230   : > { %v925_v50 = vsel %vm924_vm6, %v922_v49, -inf }
 0x231   : > { %926 = vmax.xlane.f32.xlu2 %v925_v50 }
 0x232   : > { %v915_v51 = vpop.f32.mrf.mxu2 }
 0x233   : > { %v923_v52 = vsel %vm921_vm5, -1e+30, %v915_v51 }
 0x234   : > { %v928_v53 = vsel %vm924_vm6, %v923_v52, -inf }
 0x239   : > { %929 = vmax.xlane.f32.xlu2 %v928_v53 }
 0x2a4   : > { %v927_v54 = vpop.xlane.xlu2 %926 }
 0x2a5   : > { %v931_v55 = vsub.f32 %v922_v49, %v927_v54 }
 0x2a7   : > { %v933_v56 = vmul.f32 1.442695, %v931_v55 }
 0x2a9   : > { %1665 = vpow2.f32 %v933_v56 }
 0x2ac   : > { %v930_v57 = vpop.xlane.xlu2 %929 }
 0x2ad   : > { %v932_v58 = vsub.f32 %v923_v52, %v930_v57 }
 0x2af   : > { %v1666_v59 = vpop.eup %1665  ;;  %v935_v60 = vmul.f32 1.442695, %v932_v58 }
 0x2b0   : > { %1558 = vmatmul.msk.f32.vlgmr.msra.gmra.mxu3 %vm924_vm6, %v1666_v59  ;;  %v937_v61 = vsel %vm924_vm6, %v1666_v59, 0.0 }
 0x2b1   : > { %1667 = vpow2.f32 %v935_v60  ;;  %938 = vadd.xlane.f32.xlu0 %v937_v61 }
 0x2b7   : > { %v1668_v62 = vpop.eup %1667 }
 0x2b8   : > { %1559 = vmatmul.msk.f32.vlgmr.msrb.gmra.mxu3 %vm924_vm6, %v1668_v62  ;;  %v940_v63 = vsel %vm924_vm6, %v1668_v62, 0.0 }
 0x2b9   : > { %941 = vadd.xlane.f32.xlu1 %v940_v63 }
 0x2d2   : > { %1165 = vperm.xlu1 %1655, %v541_v6   ;;  %v1296_v6 = vld [vmem:[%s2166_s29 + $0x98] sm:$0xff] }
 0x324   : > { %v939_v0 = vpop.xlane.xlu0 %938 }
 0x325   : > { %1669 = vrcp.f32 %v939_v0 }
 0x32b   : > { %v1670_v2 = vpop.eup %1669 }
 0x32c   : > { %v942_v1 = vpop.xlane.xlu1 %941 }
 0x32d   : > { %1671 = vrcp.f32 %v942_v1 }
 0x333   : > { %v965_v3 = vpop.f32.mrf.mxu3  ;;  %v1672_v13 = vpop.eup %1671 }
 0x334   : > { %v991_v4 = vmul.f32 %v1670_v2, %v965_v3 }
 0x336   : > { %v993_v8 = vrot.slane %v991_v4, 4  ;;  %v998_v12 = vperm.slane %v991_v4, %v1971_v14  ;;  %v1782_v4 = vmov 32.0  }
 0x337   : > { %1673 = vrcp.f32 %v1782_v4  ;;  %v1280_v4 = vld [vmem:[%s2166_s29 + $0x18] sm:$0xff] }
 0x338   : > { %v994_v11 = vsel %vm583_vm2, 0.0, %v993_v8  ;;  %v1015_v18 = vrot.slane %v998_v12, 4 }
 0x339   : > { %v1002_v17 = vperm.slane %v994_v11, %v1971_v14 }
 0x33b   : > { %v988_v15 = vpop.f32.mrf.mxu3  ;;  %v1027_v24 = vrot.slane %v1002_v17, 4 }
 0x33c   : > { %v992_v16 = vmul.f32 %v1672_v13, %v988_v15 }
 0x33d   : > { %v1674_v7 = vpop.eup %1673 }
 0x33e   : > { %v1003_v19 = vrot.slane %v992_v16, 4  ;;  %v1008_v20 = vperm.slane %v992_v16, %v1971_v14  ;;  %v1130_v8 = vmul.f32 32.0, %v1674_v7  ;;  %vm1134_vm7 = vweird.f32 %v1674_v7 }
 0x340   : > { %v1004_v21 = vsel %vm583_vm2, 0.0, %v1003_v19  ;;  %v1013_v22 = vrot.slane %v1008_v20, 4  ;;  %v1016_v23 = vsel %vm583_vm2, %v1008_v20, %v1015_v18  ;;  %v1131_v9 = vsub.f32 1.0, %v1130_v8  ;;  %v1279_v8 = vld [vmem:[%s2166_s29 + $0x10] sm:$0xff] }
 0x341   : > { %v1012_v26 = vperm.slane %v1004_v21, %v1971_v14  ;;  %v1024_v27 = vperm.slane %v1016_v23, %v1979_v25 }
 0x342   : > { %v1014_v28 = vsel %vm583_vm2, %v1013_v22, %v998_v12  ;;  %v1132_v10 = vmul.f32 %v1674_v7, %v1131_v9  ;;  %v1295_v9 = vld [vmem:[%s2166_s29 + $0x90] sm:$0xff] }
 0x343   : > { %v1020_v31 = vperm.slane %v1014_v28, %v1979_v25  ;;  %v1025_v32 = vrot.slane %v1012_v26, 4  ;;  %v1028_v33 = vsel %vm583_vm2, %v1012_v26, %v1027_v24  ;;  %v1039_v34 = vrot.slane %v1024_v27, 4 }
 0x344   : > { %v1036_v35 = vperm.slane %v1028_v33, %v1979_v25  ;;  %v1133_v11 = vadd.f32 %v1674_v7, %v1132_v10  ;;  %v1285_v10 = vld [vmem:[%s2166_s29 + $0x40] sm:$0xff] }
 0x345   : > { %v1026_v30 = vsel %vm583_vm2, %v1025_v32, %v1002_v17  ;;  %v1037_v36 = vrot.slane %v1020_v31, 4  ;;  %v1040_v37 = vsel %vm583_vm2, 0.0, %v1039_v34  ;;  %v1045_v43 = vsel %vm583_vm2, %v1039_v34, %v1020_v31 }
 0x346   : > { %v1032_v38 = vperm.slane %v1026_v30, %v1979_v25  ;;  %v1043_v39 = vrot.slane %v1036_v35, 4  ;;  %v1050_v40 = vrot.slane %v1040_v37, 4  ;;  %v1049_v48 = vperm.slane %v1045_v43, %v1971_v14  ;;  %v1292_v30 = vld [vmem:[%s2166_s29 + $0x78] sm:$0xff] }
 0x347   : > { %v1038_v41 = vsel %vm583_vm2, 0.0, %v1037_v36  ;;  %v2145_v12 = vsel %vm1134_vm7, %v1674_v7, %v1133_v11  ;;  %v1286_v7 = vld [vmem:[%s2166_s29 + $0x48] sm:$0xff] }
 0x348   : > { %v1041_v42 = vrot.slane %v1032_v38, 4  ;;  %v1044_v29 = vsel %vm583_vm2, 0.0, %v1043_v39  ;;  %v1051_v44 = vsel %vm583_vm2, %v1050_v40, %v1038_v41  ;;  %v1056_v49 = vsel %vm583_vm2, %v1043_v39, %v1032_v38  ;;  %v1278_v11 = vld [vmem:[%s2166_s29 + $0x8] sm:$0xff] }
 0x349   : > { %v1061_v45 = vrot.slane %v1044_v29, 4  ;;  %v1055_v46 = vperm.slane %v1051_v44, %v1971_v14  ;;  %v1060_v54 = vperm.slane %v1056_v49, %v1971_v14  ;;  %v1186_v41 = vlaneseq  ;;  %v1659_v29 = vld [vmem:[%s1122_s15] ss:$0 sm:$0xff]  ;;  %s1384_s15 = scalar_lea.vmem %s2319_s13, %s1757_s21 }
 0x34a   : > { %v1042_v47 = vsel %vm583_vm2, 0.0, %v1041_v42 }
 0x34b   : > { %v1062_v50 = vsel %vm583_vm2, %v1061_v45, %v1042_v47  ;;  %v1067_v51 = vrot.slane %v1055_v46, 4  ;;  %v1187_v44 = vshrl.u32 %v1186_v41, 7 }
 0x34c   : > { %v1066_v52 = vperm.slane %v1062_v50, %v1971_v14  ;;  %v1658_v14 = vld [vmem:[%s1093_s20] ss:$0 sm:$0xff]  ;;  %s1124_s20 = scalar_lea.vmem %s2314_s8, %s1757_s21 }
 0x34d   : > { %v1068_v53 = vsel %vm583_vm2, %v1067_v51, %v1049_v48  ;;  %v1660_v46 = vld [vmem:[%s1124_s20] ss:$0 sm:$0xff]  ;;  %v2179_v48 = vpop.permute.xlu1 %1165  ;;  %v2181_v49 = vadd.s32 4294967295, %v1187_v44 }
 0x34e   : > { %v1072_v55 = vperm.slane %v1068_v53, %v1979_v25  ;;  %v1073_v56 = vrot.slane %v1066_v52, 4  ;;  %v2190_v53 = vadd.s32 1, %v1187_v44 }
 0x34f   : > { %vm1189_vm11 = vcmp.ge.s32.totalorder %v2181_v49, 0 }
 0x350   : > { %v1074_v57 = vsel %vm583_vm2, %v1073_v56, %v1060_v54  ;;  %v1081_v58 = vrot.slane %v1072_v55, 4  ;;  %vm1247_vm12 = vcmp.lt.s32.totalorder %v2190_v53, 8  ;;  %v1663_v53 = vld [vmem:[%s1384_s15] ss:$0 sm:$0xff] }
 0x351   : > { %v1078_v59 = vperm.slane %v1074_v57, %v1979_v25  ;;  %v1291_v57 = vld [vmem:[%s2166_s29 + $0x70] sm:$0xff] }
 0x353   : > { %v1082_v60 = vsel %vm583_vm2, %v1078_v59, %v1081_v58  ;;  %v1079_v61 = vrot.slane %v1078_v59, 4  ;;  %v1284_v58 = vld [vmem:[%s2166_s29 + $0x38] sm:$0xff] }
 0x354   : > { %1084 = vrot.lane.b32.xlu2 %v1082_v60, %s1781_s24  ;;  %s1170_s24 = scalar_lea.vmem %s2315_s9, %s1169_s23  ;;  %v1300_v59 = vld [vmem:[%s2166_s29 + $0xb8] sm:$0xff]  ;;  %1317 = vmatpush.msra.mxu1 %v1284_v58  ;;  %v1290_v60 = vld [vmem:[%s2166_s29 + $0x68] sm:$0xff]  ;;  %s1433_s23 = sshll.u32 %s1952_s19, 4  ;;  %s1434_s23 = int_to_ptr.vmem [resolvable:$true] %s1433_s23 }
 0x355   : > { %v1080_v62 = vsel %vm583_vm2, %v1079_v61, %v1072_v55  ;;  %v1178_v18 = vld [vmem:[%s1170_s24 + $0x38] sm:$0xff]  ;;  %v1177_v19 = vld [vmem:[%s1170_s24 + $0x30] sm:$0xff]  ;;  %v1176_v21 = vld [vmem:[%s1170_s24 + $0x28] sm:$0xff]  ;;  %1370 = vmatpush.msrb.mxu0 %v1300_v59 }
 0x356   : > { %v1174_v20 = vld [vmem:[%s1170_s24 + $0x18] sm:$0xff]  ;;  %1235 = vmatpush.msra.mxu3 %v1178_v18  ;;  %v1173_v22 = vld [vmem:[%s1170_s24 + $0x10] sm:$0xff]  ;;  %v1175_v23 = vld [vmem:[%s1170_s24 + $0x20] sm:$0xff] }
 0x357   : > { %1208 = vmatpush.msrb.mxu2 %v1174_v20  ;;  %v1172_v24 = vld [vmem:[%s1170_s24 + $0x8] sm:$0xff]  ;;  %v1182_v26 = vld [vmem:[%s1170_s24 + $0x58] sm:$0xff]  ;;  %v1171_v27 = vld [vmem:[%s1170_s24] sm:$0xff] }
 0x358   : > { %1236 = vmatpush.msra.mxu3 %v1177_v19  ;;  %v1181_v28 = vld [vmem:[%s1170_s24 + $0x50] sm:$0xff]  ;;  %v1180_v33 = vld [vmem:[%s1170_s24 + $0x48] sm:$0xff]  ;;  %v1179_v35 = vld [vmem:[%s1170_s24 + $0x40] sm:$0xff]  ;;  %s1386_s24 = scalar_lea.vmem %s2320_s14, %s1757_s21 }
 0x359   : > { %1209 = vmatpush.msrb.mxu2 %v1173_v22  ;;  %v1283_v61 = vld [vmem:[%s2166_s29 + $0x30] sm:$0xff] }
 0x35a   : > { %1237 = vmatpush.msra.mxu3 %v1176_v21  ;;  %1318 = vmatpush.msra.mxu1 %v1283_v61 }
 0x35b   : > { %1210 = vmatpush.msrb.mxu2 %v1172_v24 }
 0x35c   : > { %1238 = vmatpush.msra.mxu3 %v1175_v23 }
 0x35d   : > { %1211 = vmatpush.msrb.mxu2 %v1171_v27 }
 0x35e   : > { %1265 = vmatpush.msrb.mxu3 %v1182_v26 }
 0x35f   : > { %1344 = vmatpush.msra.mxu2 %v1292_v30 }
 0x360   : > { %1266 = vmatpush.msrb.mxu3 %v1181_v28 }
 0x361   : > { %1345 = vmatpush.msra.mxu2 %v1291_v57 }
 0x362   : > { %1267 = vmatpush.msrb.mxu3 %v1180_v33 }
 0x363   : > { %1346 = vmatpush.msra.mxu2 %v1290_v60 }
 0x364   : > { %1268 = vmatpush.msrb.mxu3 %v1179_v35 }
 0x3ae   : > { %v1085_v63 = vpop.permute.xlu2 %1084 }
 0x3af   : > { %v1087_v0 = vsel %vm865_vm3, %v1080_v62, %v1085_v63  ;;  %v1299_v62 = vld [vmem:[%s2166_s29 + $0xb0] sm:$0xff]  ;;  %v1289_v63 = vld [vmem:[%s2166_s29 + $0x60] sm:$0xff] }
 0x3b0   : > { %1560 = vmatmul.msk.f32.vlgmr.msrb.gmra.mxu1 %vm554_vm1, %v1087_v0  ;;  %1371 = vmatpush.msrb.mxu0 %v1299_v62  ;;  %v1282_v0 = vld [vmem:[%s2166_s29 + $0x28] sm:$0xff] }
 0x3b1   : > { %1347 = vmatpush.msra.mxu2 %v1289_v63  ;;  %1319 = vmatpush.msra.mxu1 %v1282_v0 }
 0x42d   : > { %v1118_v1 = vpop.f32.mrf.mxu1 }
 0x42e   : > { %v1119_v25 = vadd.f32 %v1658_v14, %v1118_v1  ;;  %v1298_v14 = vld [vmem:[%s2166_s29 + $0xa8] sm:$0xff]  ;;  %v1288_v1 = vld [vmem:[%s2166_s29 + $0x58] sm:$0xff] }
 0x42f   : > { %1372 = vmatpush.msrb.mxu0 %v1298_v14  ;;  %1348 = vmatpush.msra.mxu2 %v1288_v1 }
 0x430   : > { %v1121_v2 = vadd.f32 %v1119_v25, %v1967_v5  ;;  %v1281_v25 = vld [vmem:[%s2166_s29 + $0x20] sm:$0xff] }
 0x431   : > { %1320 = vmatpush.msra.mxu1 %v1281_v25 }
 0x432   : > { %v1126_v3 = vsel %vm554_vm1, %v1121_v2, 0.0 }
 0x433   : > { %1127 = vadd.xlane.f32.xlu2 %v1126_v3  ;;  %v1287_v3 = vld [vmem:[%s2166_s29 + $0x50] sm:$0xff]  ;;  %1321 = vmatpush.msra.mxu1 %v1280_v4 }
 0x434   : > { %1349 = vmatpush.msra.mxu2 %v1287_v3 }
 0x435   : > { %1322 = vmatpush.msra.mxu1 %v1279_v8 }
 0x436   : > { %1350 = vmatpush.msra.mxu2 %v1286_v7 }
 0x437   : > { %1323 = vmatpush.msra.mxu1 %v1278_v11 }
 0x438   : > { %1351 = vmatpush.msra.mxu2 %v1285_v10 }
 0x4a6   : > { %v1128_v13 = vpop.xlane.xlu2 %1127 }
 0x4a7   : > { %v1136_v5 = vmul.f32 %v2145_v12, %v1128_v13  ;;  %v1294_v13 = vld [vmem:[%s2166_s29 + $0x88] sm:$0xff] }
 0x4a9   : > { %v1137_v15 = vsub.f32 %v1121_v2, %v1136_v5  ;;  %v1297_v2 = vld [vmem:[%s2166_s29 + $0xa0] sm:$0xff] }
 0x4aa   : > { %1373 = vmatpush.msrb.mxu0 %v1297_v2  ;;  %v1277_v5 = vld [vmem:[%s2166_s29] sm:$0xff] }
 0x4ab   : > { %v1138_v16 = vmul.f32 %v1137_v15, %v1137_v15  ;;  %1324 = vmatpush.msra.mxu1 %v1277_v5 }
 0x4ac   : > { %1374 = vmatpush.msrb.mxu0 %v1296_v6 }
 0x4ad   : > { %v1139_v17 = vsel %vm554_vm1, %v1138_v16, 0.0 }
 0x4ae   : > { %1140 = vadd.xlane.f32.xlu0 %v1139_v17  ;;  %1375 = vmatpush.msrb.mxu0 %v1295_v9  ;;  %v1661_v17 = vld [vmem:[%s1183_s28] ss:$0 sm:$0xff] }
 0x4b0   : > { %1376 = vmatpush.msrb.mxu0 %v1294_v13 }
 0x521   : > { %v1141_v31 = vpop.xlane.xlu0 %1140 }
 0x522   : > { %v1142_v32 = vmul.f32 %v1141_v31, %v2145_v12  ;;  %v1662_v31 = vld [vmem:[%s1301_s25] ss:$0 sm:$0xff]  ;;  %s1568_s25 = sshll.u32 %s1761_s22, 3  ;;  %s1421_s22 = scalar_lea.sflag [#allocation3], %s519_s27 }
 0x524   : > { %v1143_v34 = vadd.f32 1e-05, %v1142_v32 }
 0x526   : > { %1675 = vrsqrt.f32 %v1143_v34  ;;  %vm1150_vm9 = vweird.f32 %v1143_v34 }
 0x52c   : > { %v1676_v36 = vpop.eup %1675 }
 0x52d   : > { %v1145_v37 = vmul.f32 %v1676_v36, %v1143_v34  ;;  %vm1151_vm8 = vweird.f32 %v1676_v36 }
 0x52e   : > { %vm1152_vm10 = vmor %vm1150_vm9, %vm1151_vm8 }
 0x52f   : > { %v1146_v38 = vmul.f32 %v1676_v36, %v1145_v37 }
 0x531   : > { %v1147_v39 = vmul.f32 0.5, %v1146_v38 }
 0x533   : > { %v1148_v40 = vsub.f32 1.5, %v1147_v39 }
 0x535   : > { %v1149_v42 = vmul.f32 %v1676_v36, %v1148_v40 }
 0x537   : > { %v1153_v43 = vsel %vm1152_vm10, %v1676_v36, %v1149_v42 }
 0x538   : > { %v1154_v45 = vmul.f32 %v1153_v43, %v1137_v15  ;;  %v1293_v15 = vld [vmem:[%s2166_s29 + $0x80] sm:$0xff]  ;;  %s2350_s29 = sld [smem:[#allocation16_spill]] }
 0x539   : > { %1377 = vmatpush.msrb.mxu0 %v1293_v15 }
 0x53a   : > { %v1158_v47 = vmul.f32 %v1659_v29, %v1154_v45 }
 0x53c   : > { %v1162_v50 = vadd.f32 %v1660_v46, %v1158_v47 }
 0x53e   : > { %v2184_v51 = vmul.f32 %v2179_v48, %v1162_v50  ;;  %s1431_s17 = scalar_lea.hbm %s2350_s29, %s1568_s25  ;;  %s1699_s25 = scalar_lea.hbm %s2350_s29, 16 }
 0x53f   : > { %s1435_s16 = sshll.u32 %s1431_s17, 4  ;;  %s1436_s16 = int_to_ptr.hbm [resolvable:$true] %s1435_s16 }
 0x540   : > { %1562 = vmatmul.msk.f32.vlgmr.msra.gmra.mxu3 %vm554_vm1, %v2184_v51  ;;  %v1185_v52 = vrot.slane %v2184_v51, 7  ;;  %v1244_v55 = vrot.slane %v2184_v51, 1  ;;  %s1693_s15 = sshra.s32 %s1436_s16, 4  ;;  %s1694_s15 = int_to_ptr.hbm [resolvable:$true] %s1693_s15 }
 0x541   : > { %s1695_s20 = scalar_lea.hbm %s1694_s15, 8  ;;  %p1700_p4 = scmp.lt.s32.totalorder %s1694_s15, %s2350_s29 }
 0x542   : > { %v1192_v54 = vsel %vm1189_vm11, %v1185_v52, 0.0  ;;  %v1249_v56 = vsel %vm1247_vm12, %v1244_v55, 0.0  ;;  %p1696_p0 = scmp.ne.s32.totalorder %s1694_s15, %s1695_s20  ;;  %p1701_p5 = scmp.lt.s32.totalorder %s1699_s25, %s1695_s20 }
 0x543   : > { %1561 = vmatmul.msk.f32.vlgmr.msrb.gmra.mxu2 %vm554_vm1, %v1192_v54 }
 0x544   : > { %p1697_p1 = pnand %p1696_p0, %p1912_p3  ;;  %p1702_p6 = por %p1701_p5, %p1700_p4 }
 0x546   : > { %p1698_p2 = pneg %p1697_p1 }
 0x548   : > { %1563 = vmatmul.msk.f32.vlgmr.msrb.gmra.mxu3 %vm554_vm1, %v1249_v56  ;;  %p1703_p7 = pnand %p1702_p6, %p1698_p2 }
 0x5c3   : > { %v1240_v16 = vpop.f32.mrf.mxu3 }
 0x5c6   : > { %v1213_v18 = vpop.f32.mrf.mxu2 }
 0x5c7   : > { %v1219_v19 = vadd.f32 %v1661_v17, %v1213_v18 }
 0x5c9   : > { %v1243_v20 = vadd.f32 %v1240_v16, %v1219_v19 }
 0x5cb   : > { %v1270_v21 = vpop.f32.mrf.mxu3 }
 0x5cc   : > { %v1273_v22 = vadd.f32 %v1270_v21, %v1243_v20 }
 0x5ce   : > { %v1274_v23 = vmax.f32 %v1273_v22, 0.0 }
 0x5d0   : > { %v1303_v24 = vrot.slane %v1274_v23, 7  ;;  %1565 = vmatmul.msk.f32.vlgmr.msra.gmra.mxu2 %vm1305_vm13, %v1274_v23  ;;  %v1357_v26 = vrot.slane %v1274_v23, 1 }
 0x5d2   : > { %v1304_v27 = vsel %vm1189_vm11, %v1303_v24, 0.0  ;;  %v1358_v28 = vsel %vm1247_vm12, %v1357_v26, 0.0 }
 0x5d3   : > { %1564 = vmatmul.msk.f32.vlgmr.msra.gmra.mxu1 %vm1305_vm13, %v1304_v27  ;;  %1566 = vmatmul.msk.f32.vlgmr.msrb.gmra.mxu0 %vm1305_vm13, %v1358_v28 }
 0x650   : > { %v1326_v32 = vpop.f32.mrf.mxu1  ;;  %v1379_v30 = vpop.f32.mrf.mxu0 }
 0x651   : > { %v1332_v33 = vadd.f32 %v1662_v31, %v1326_v32 }
 0x653   : > { %v1353_v34 = vpop.f32.mrf.mxu2 }
 0x654   : > { %v1356_v35 = vadd.f32 %v1353_v34, %v1332_v33 }
 0x656   : > { %v1382_v36 = vadd.f32 %v1379_v30, %v1356_v35 }
 0x658   : > { %v1383_v37 = vadd.f32 %v1382_v36, %v2184_v51 }
 0x65a   : > { %v1388_v38 = vsel %vm554_vm1, %v1383_v37, 0.0 }
 0x65b   : > { %1389 = vadd.xlane.f32.xlu0 %v1388_v38 }
 0x6ce   : > { %v1390_v39 = vpop.xlane.xlu0 %1389 }
 0x6cf   : > { %v1391_v40 = vmul.f32 %v1390_v39, %v2145_v12 }
 0x6d1   : > { %v1392_v41 = vsub.f32 %v1383_v37, %v1391_v40 }
 0x6d3   : > { %v1393_v42 = vmul.f32 %v1392_v41, %v1392_v41 }
 0x6d5   : > { %v1394_v29 = vsel %vm554_vm1, %v1393_v42, 0.0 }
 0x6d6   : > { %1395 = vadd.xlane.f32.xlu0 %v1394_v29 }
 0x749   : > { %v1396_v43 = vpop.xlane.xlu0 %1395 }
 0x74a   : > { %v1397_v44 = vmul.f32 %v1396_v43, %v2145_v12  ;;  %v1664_v12 = vld [vmem:[%s1386_s24] ss:$0 sm:$0xff] }
 0x74c   : > { %v1398_v45 = vadd.f32 1e-05, %v1397_v44 }
 0x74e   : > { %1677 = vrsqrt.f32 %v1398_v45  ;;  %vm1405_vm15 = vweird.f32 %v1398_v45 }
 0x754   : > { %v1678_v46 = vpop.eup %1677 }
 0x755   : > { %v1400_v47 = vmul.f32 %v1678_v46, %v1398_v45  ;;  %vm1406_vm14 = vweird.f32 %v1678_v46 }
 0x756   : > { %vm1407_vm0 = vmor %vm1405_vm15, %vm1406_vm14 }
 0x757   : > { %v1401_v49 = vmul.f32 %v1678_v46, %v1400_v47 }
 0x759   : > { %v1402_v50 = vmul.f32 0.5, %v1401_v49 }
 0x75b   : > { %v1403_v51 = vsub.f32 1.5, %v1402_v50 }
 0x75d   : > { %v1404_v52 = vmul.f32 %v1678_v46, %v1403_v51 }
 0x75f   : > { %v1408_v54 = vsel %vm1407_vm0, %v1678_v46, %v1404_v52 }
 0x760   : > { %v1409_v55 = vmul.f32 %v1408_v54, %v1392_v41 }
 0x762   : > { %v1413_v56 = vmul.f32 %v1663_v53, %v1409_v55 }
 0x764   : > { %v1417_v57 = vadd.f32 %v1664_v12, %v1413_v56 }
 0x766   : > { %v1418_v58 = vmul.f32 %v1417_v57, %v2179_v48 }
 0x768   : > { %1419 = vst.msk [vmem:[%s1952_s19] sm:$0xff] %vm554_vm1, %v1418_v58 }
 0x769   : > { %1706 = shalt.err (!%p1703_p7)
}
 0x76a   : > { %1571 = dma.vmem_to_hbm [thread:$0]  (%p1912_p3), %s1434_s23, 128, %s1436_s16, %s1421_s22  }
 0x76b PF: > { %s2351_s19 = sld [smem:[#allocation10_spill]] }
 0x76c   : > { %s2352_s27 = sld [smem:[#allocation5_spill]] }
 0x771   : > { %p1577_p8 = scmp.ge.s32.totalorder %s2351_s19, 2 }
 0x772   : > { %s1447_s17 = sand.u32 1, %s2352_s27  }
 0x773   : > { %p1574_p10 = pnand %p1577_p8, %p1922_p9  ;;  %s1448_s28 = scalar_lea.sflag [#allocation3], %s1447_s17 }
 0x775   : > { %p1575_p11 = pneg %p1574_p10 }
 0x777   : > { %1740 = dma.done.wait (%p1575_p11), %s1448_s28, 128  }
 0x778   : > { %1742 = vsyncadd (%p1575_p11), %s1448_s28, 4294967168  ;;  %s28_s25 = sadd.s32 1, %s2351_s19   ;;  %s2354_s18 = sld [smem:[#allocation6_spill]] }
 0x779   : > { %p25_p12 = scmp.ge.s32.totalorder %s28_s25, 6   ;;  %s2355_s19 = sld [smem:[#allocation7_spill]] }
 0x77a   : > { %s2356_s20 = sld [smem:[#allocation15_spill]] }
 0x77b   : > { %s2357_s21 = sld [smem:[#allocation8_spill]]  ;;  %27 = sbr.rel (!%p25_p12) target bundleno = 7 (0x7), region = 137 }
 0x77c   : > { %s2358_s22 = sld [smem:[#allocation9_spill]] }
 0x77d   : > { %s2359_s23 = sld [smem:[#allocation11_spill]] }
 0x77e   : > { %s2360_s24 = sld [smem:[#allocation13_spill]] }
 0x780   :  { %1454 = vsyncpa [#allocation3], 1 }
 0x781   :  { %1456 = vsyncpa [#allocation3 + $0x1], 1 }

</bundles_post_ra>
